<compile_context>
chip_gen: v7x
topology: tpu7x:2x2x1
jax: 0.10.0
libtpu: 0.0.40
codegen_flags: <defaults>
</compile_context>

<pallas_src>
import jax
import jax.numpy as jnp
from jax.experimental import pallas as pl
from jax.experimental.pallas import tpu as pltpu

NUM_LAYERS = 4
NUM_FILTERS = 8
FEATURE_DIM = NUM_FILTERS        # encoder output dim
OTHERS_DIM = 2
ACTION_DIM = 3
Q_IN = FEATURE_DIM + OTHERS_DIM + ACTION_DIM     # = feature_dim + 5 = 13
Q_IN_PAD = 16                                    # padded K of the first Q matmul
TAIL_DIM = Q_IN_PAD - FEATURE_DIM                # 8 = others(2)+action(3)+zeros(3)
Q_H1, Q_H2 = 64, 32


def _round_up(x, m):
    return (x + m - 1) // m * m


# ----------------------------------------------------------------------------
# Fused kernel: encoder (4 conv layers) + avg pool + concat + twin Q heads
# ----------------------------------------------------------------------------
def _critic_fused_kernel(p0_ref, tail_ref,
                         w1_ref, b1_ref, w2_ref, b2_ref,
                         w3_ref, b3_ref, w4_ref, b4_ref,
                         qw1_ref, qb1_ref, qw2_ref, qb2_ref,
                         qw3_ref, qb3_ref, out_ref):
    bf16 = jnp.bfloat16

    def mm_relu(x, w_ref, b_ref):
        # bf16 MXU operands, f32 accumulation, f32 bias-add/ReLU epilogue.
        y = jnp.dot(x, w_ref[...], preferred_element_type=jnp.float32)
        return jnp.maximum(y + b_ref[...], 0.0)

    # --- Encoder.  One sample per sublane row; block-diagonal conv weights
    # make every layer's output land directly in the next layer's patch
    # layout (lanes fully dense, no reshapes / strided gathers / concats). ---
    z = mm_relu(p0_ref[...], w1_ref, b1_ref).astype(bf16)      # (TB, 512)
    z = mm_relu(z, w2_ref, b2_ref).astype(bf16)                # (TB, 128)
    z = mm_relu(z, w3_ref, b3_ref).astype(bf16)                # (TB, 32)
    feat = mm_relu(z, w4_ref, b4_ref)                          # (TB, 8) f32
    # adaptive_avg_pool2d((1,1)) is the identity here: the 4th stride-2 conv
    # of a 16x16 input leaves exactly one spatial position per sample.

    # --- Twin Q heads (weights merged host-side into lane-dense slabs). ---
    x = jnp.concatenate([feat, tail_ref[...]], axis=-1).astype(bf16)  # (TB, 16)
    h = mm_relu(x, qw1_ref, qb1_ref).astype(bf16)              # (TB, 128)
    h = mm_relu(h, qw2_ref, qb2_ref)                           # (TB, 64) f32
    # Final 32->1 projections on the VPU/XLU: multiply + lane reduce (no MXU
    # fill/drain for a 32-MAC dot product).
    prod = h * qw3_ref[...]                                    # (TB, 64)
    q1 = jnp.sum(prod[:, :Q_H2], axis=-1, keepdims=True)
    q2 = jnp.sum(prod[:, Q_H2:], axis=-1, keepdims=True)
    out_ref[...] = jnp.concatenate([q1, q2], axis=-1) + qb3_ref[...]  # (TB, 2)


# ----------------------------------------------------------------------------
# Host-side packing: one lane-dense row per sample, Morton patch order
# ----------------------------------------------------------------------------
def _pack_obs(obs, num_layers=NUM_LAYERS):
    """(B, C, H, W) -> (B, 4**L * C).

    Row b holds sample b's layer-1 patches in Morton order of the layer-1
    output pixel, each patch laid out (kh, kw, c).  With this order, every
    later conv layer's patch matrix is a contiguous per-row regrouping of the
    previous layer's output, which the block-diagonal fused weights exploit.
    """
    B, C, H, W = obs.shape
    L = num_layers
    assert H == 2 ** L and W == 2 ** L, "script assumes spatial == 2**num_layers"
    x = obs.reshape((B, C) + (2,) * L + (2,) * L)
    # axes: 0=B, 1=C, 2..2+L-1 = h bits (MSB..LSB), 2+L..2+2L-1 = w bits
    perm = [0]
    for i in range(L):                       # interleave all h/w bit pairs
        perm += [2 + i, 2 + L + i]
    perm += [1]                              # channels fastest
    x = jnp.transpose(x, perm)
    return x.reshape(B, (4 ** L) * C)


# ----------------------------------------------------------------------------
# Fused forward pass (single batch-tiled pallas_call)
# ----------------------------------------------------------------------------
_WEIGHT_KEYS = ("w1", "b1", "w2", "b2", "w3", "b3", "w4", "b4",
                "qw1", "qb1", "qw2", "qb2", "qw3", "qb3")


@jax.jit
def critic_forward(params, obs, action, others):
    B = obs.shape[0]
    p0 = _pack_obs(obs).astype(jnp.bfloat16)                 # (B, 1024) lane-dense
    tail = jnp.concatenate(
        [others, action,
         jnp.zeros((B, TAIL_DIM - OTHERS_DIM - ACTION_DIM), jnp.float32)],
        axis=-1).astype(jnp.float32)                         # (B, 8)

    # Batch tile: cap at 128 so the per-tile VMEM footprint (double-buffered
    # bf16 input ~0.5 MiB + ~1.5 MiB resident weights) stays far below v7x's
    # 32 MiB scoped default; pad B up to a whole number of tiles.
    TB = min(128, _round_up(B, 8))
    B_pad = _round_up(B, TB)
    if B_pad != B:
        p0 = jnp.pad(p0, ((0, B_pad - B), (0, 0)))
        tail = jnp.pad(tail, ((0, B_pad - B), (0, 0)))

    weights = [params[k] for k in _WEIGHT_KEYS]
    in_specs = (
        [pl.BlockSpec((TB, p0.shape[1]), lambda i: (i, 0)),   # obs patches
         pl.BlockSpec((TB, TAIL_DIM), lambda i: (i, 0))]      # [others|action|0]
        + [pl.BlockSpec(w.shape, lambda i: (0, 0)) for w in weights])

    out = pl.pallas_call(
        _critic_fused_kernel,
        grid=(B_pad // TB,),
        in_specs=in_specs,
        out_specs=pl.BlockSpec((TB, 2), lambda i: (i, 0)),
        out_shape=jax.ShapeDtypeStruct((B_pad, 2), jnp.float32),
        compiler_params=pltpu.CompilerParams(
            dimension_semantics=("parallel",),       # v7x: shard tiles over TCs
            vmem_limit_bytes=32 * 1024 * 1024),
    )(p0, tail, *weights)
    return out[:B, 0:1], out[:B, 1:2]


# ----------------------------------------------------------------------------
# Parameters (synthetic, deterministic) + weight fusing
# ----------------------------------------------------------------------------
def init_raw_params(key, obs_channels):
    keys = iter(jax.random.split(key, 32))
    convs = []
    in_c = obs_channels
    for _ in range(NUM_LAYERS):
        fan_in = 4 * in_c
        # (4*C, F), rows ordered (kh, kw, c).  From a PyTorch Conv2d weight
        # (F, C, 2, 2): w.permute(2, 3, 1, 0).reshape(4*C, F).
        w = jax.random.normal(next(keys), (fan_in, NUM_FILTERS),
                              jnp.float32) / jnp.sqrt(fan_in)
        b = jax.random.normal(next(keys), (1, NUM_FILTERS), jnp.float32) * 0.01
        convs.append((w, b))
        in_c = NUM_FILTERS

    def q_mlp():
        p = []
        for din, dout in [(Q_IN, Q_H1), (Q_H1, Q_H2), (Q_H2, 1)]:
            w = jax.random.normal(next(keys), (din, dout),
                                  jnp.float32) / jnp.sqrt(din)
            b = jax.random.normal(next(keys), (1, dout), jnp.float32) * 0.01
            p += [w, b]
        return tuple(p)

    return {"convs": convs, "q1": q_mlp(), "q2": q_mlp()}


def fuse_params(raw):
    """Merge weights into the lane-dense slabs the kernel expects (run once)."""
    fused = {}
    # Conv layers: block-diagonal kron(I_n, W); n = #output pixels of layer k.
    n_blocks = [4 ** (NUM_LAYERS - k) for k in range(1, NUM_LAYERS + 1)]  # 64,16,4,1
    for k, ((w, b), n) in enumerate(zip(raw["convs"], n_blocks), start=1):
        fused[f"w{k}"] = jnp.kron(jnp.eye(n, dtype=jnp.float32), w).astype(jnp.bfloat16)
        fused[f"b{k}"] = jnp.tile(b, (1, n))                         # f32

    w1a, b1a, w2a, b2a, w3a, b3a = raw["q1"]
    w1b, b1b, w2b, b2b, w3b, b3b = raw["q2"]
    pad_k = lambda w: jnp.pad(w, ((0, Q_IN_PAD - Q_IN), (0, 0)))     # 13 -> 16 rows
    fused["qw1"] = jnp.concatenate([pad_k(w1a), pad_k(w1b)], axis=1).astype(jnp.bfloat16)
    fused["qb1"] = jnp.concatenate([b1a, b1b], axis=1)               # (1, 128)
    qw2 = jnp.zeros((2 * Q_H1, 2 * Q_H2), jnp.float32)
    qw2 = qw2.at[:Q_H1, :Q_H2].set(w2a).at[Q_H1:, Q_H2:].set(w2b)
    fused["qw2"] = qw2.astype(jnp.bfloat16)                          # (128, 64)
    fused["qb2"] = jnp.concatenate([b2a, b2b], axis=1)               # (1, 64)
    fused["qw3"] = jnp.concatenate([w3a.T, w3b.T], axis=1)           # (1, 64) f32
    fused["qb3"] = jnp.concatenate([b3a, b3b], axis=1)               # (1, 2)
    return fused


# ----------------------------------------------------------------------------
# Pure-JAX reference of the original PyTorch module (for correctness check)
# ----------------------------------------------------------------------------
def critic_reference(raw, obs, action, others):
    hi = jax.lax.Precision.HIGHEST
    h = obs
    for (w, b) in raw["convs"]:
        cin = h.shape[1]
        w_conv = w.reshape(2, 2, cin, NUM_FILTERS).transpose(3, 2, 0, 1)  # OIHW
        h = jax.lax.conv_general_dilated(
            h, w_conv, window_strides=(2, 2), padding="VALID",
            dimension_numbers=("NCHW", "OIHW", "NCHW"), precision=hi)
        h = jnp.maximum(h + b.reshape(1, NUM_FILTERS, 1, 1), 0.0)
    feat = jnp.mean(h, axis=(2, 3))
    x = jnp.concatenate([feat, others, action], axis=-1)

    def mlp(p):
        w1, b1, w2, b2, w3, b3 = p
        hh = jnp.maximum(jnp.dot(x, w1, precision=hi) + b1, 0.0)
        hh = jnp.maximum(jnp.dot(hh, w2, precision=hi) + b2, 0.0)
        return jnp.dot(hh, w3, precision=hi) + b3

    return mlp(raw["q1"]), mlp(raw["q2"])


# ----------------------------------------------------------------------------
if __name__ == "__main__":
    key = jax.random.PRNGKey(0)
    k_obs, k_act, k_oth, k_par = jax.random.split(key, 4)

    B, C = 2, 4
    obs = jax.random.normal(k_obs, (B, C, 16, 16), jnp.float32)
    others = jax.random.normal(k_oth, (B, OTHERS_DIM), jnp.float32)
    action = jax.random.normal(k_act, (B, ACTION_DIM), jnp.float32)

    raw = init_raw_params(k_par, obs_channels=C)
    params = fuse_params(raw)

    q1, q2 = critic_forward(params, obs, action, others)
    jax.block_until_ready((q1, q2))
    assert q1.shape == (B, 1) and q2.shape == (B, 1)

    # Correctness check against the HIGHEST-precision JAX reference of the
    # PyTorch module (tolerance loosened for bf16 MXU operands).
    r1, r2 = critic_reference(raw, obs, action, others)
    assert jnp.allclose(q1, r1, atol=5e-2, rtol=5e-2)
    assert jnp.allclose(q2, r2, atol=5e-2, rtol=5e-2)

    # NOTE: benchmark at production batch sizes from an xprof trace (min of
    # several runs); at B=2 this kernel is pure launch/DMA overhead.
    print("KERNEL_OK")
</pallas_src>

<mosaic_0001>
module attributes {stable_mosaic.version = 11 : i64} {
  func.func @_critic_fused_kernel(%arg0: i32, %arg1: memref<8x1024xbf16, #tpu.memory_space<vmem>>, %arg2: memref<8x8xf32, #tpu.memory_space<vmem>>, %arg3: memref<1024x512xbf16, #tpu.memory_space<vmem>>, %arg4: memref<1x512xf32, #tpu.memory_space<vmem>>, %arg5: memref<512x128xbf16, #tpu.memory_space<vmem>>, %arg6: memref<1x128xf32, #tpu.memory_space<vmem>>, %arg7: memref<128x32xbf16, #tpu.memory_space<vmem>>, %arg8: memref<1x32xf32, #tpu.memory_space<vmem>>, %arg9: memref<32x8xbf16, #tpu.memory_space<vmem>>, %arg10: memref<1x8xf32, #tpu.memory_space<vmem>>, %arg11: memref<16x128xbf16, #tpu.memory_space<vmem>>, %arg12: memref<1x128xf32, #tpu.memory_space<vmem>>, %arg13: memref<128x64xbf16, #tpu.memory_space<vmem>>, %arg14: memref<1x64xf32, #tpu.memory_space<vmem>>, %arg15: memref<1x64xf32, #tpu.memory_space<vmem>>, %arg16: memref<1x2xf32, #tpu.memory_space<vmem>>, %arg17: memref<8x2xf32, #tpu.memory_space<vmem>>) attributes {dimension_semantics = [#tpu.dimension_semantics<parallel>], iteration_bounds = array<i64: 1>, scalar_prefetch = 0 : i64, scratch_operands = 0 : i64, tpu.core_type = #tpu.core_type<tc>, window_params = [{transform_indices = @transform_0, window_bounds = array<i64: 8, 1024>}, {transform_indices = @transform_1, window_bounds = array<i64: 8, 8>}, {pipeline_mode = #tpu.pipeline_mode<synchronous>, transform_indices = @transform_2, window_bounds = array<i64: 1024, 512>}, {pipeline_mode = #tpu.pipeline_mode<synchronous>, transform_indices = @transform_3, window_bounds = array<i64: 1, 512>}, {pipeline_mode = #tpu.pipeline_mode<synchronous>, transform_indices = @transform_4, window_bounds = array<i64: 512, 128>}, {pipeline_mode = #tpu.pipeline_mode<synchronous>, transform_indices = @transform_5, window_bounds = array<i64: 1, 128>}, {pipeline_mode = #tpu.pipeline_mode<synchronous>, transform_indices = @transform_6, window_bounds = array<i64: 128, 32>}, {pipeline_mode = #tpu.pipeline_mode<synchronous>, transform_indices = @transform_7, window_bounds = array<i64: 1, 32>}, {pipeline_mode = #tpu.pipeline_mode<synchronous>, transform_indices = @transform_8, window_bounds = array<i64: 32, 8>}, {pipeline_mode = #tpu.pipeline_mode<synchronous>, transform_indices = @transform_9, window_bounds = array<i64: 1, 8>}, {pipeline_mode = #tpu.pipeline_mode<synchronous>, transform_indices = @transform_10, window_bounds = array<i64: 16, 128>}, {pipeline_mode = #tpu.pipeline_mode<synchronous>, transform_indices = @transform_11, window_bounds = array<i64: 1, 128>}, {pipeline_mode = #tpu.pipeline_mode<synchronous>, transform_indices = @transform_12, window_bounds = array<i64: 128, 64>}, {pipeline_mode = #tpu.pipeline_mode<synchronous>, transform_indices = @transform_13, window_bounds = array<i64: 1, 64>}, {pipeline_mode = #tpu.pipeline_mode<synchronous>, transform_indices = @transform_14, window_bounds = array<i64: 1, 64>}, {pipeline_mode = #tpu.pipeline_mode<synchronous>, transform_indices = @transform_15, window_bounds = array<i64: 1, 2>}, {transform_indices = @transform_16, window_bounds = array<i64: 8, 2>}]} {
    %c0 = arith.constant 0 : index
    %c0_0 = arith.constant 0 : index
    %0 = vector.load %arg1[%c0, %c0_0] : memref<8x1024xbf16, #tpu.memory_space<vmem>>, vector<8x1024xbf16>
    %c0_1 = arith.constant 0 : index
    %c0_2 = arith.constant 0 : index
    %1 = vector.load %arg3[%c0_1, %c0_2] : memref<1024x512xbf16, #tpu.memory_space<vmem>>, vector<1024x512xbf16>
    %cst = arith.constant dense<0.000000e+00> : vector<8x512xf32>
    %2 = tpu.matmul %0, %1, %cst {dimension_numbers = #tpu.dot_dimension_numbers<[1], [0], [0], [1], [0, 0, 1, 1], [], []>} : vector<8x1024xbf16>, vector<1024x512xbf16>, vector<8x512xf32> -> vector<8x512xf32>
    %c0_3 = arith.constant 0 : index
    %c0_4 = arith.constant 0 : index
    %3 = vector.load %arg4[%c0_3, %c0_4] : memref<1x512xf32, #tpu.memory_space<vmem>>, vector<1x512xf32>
    %4 = vector.broadcast %3 : vector<1x512xf32> to vector<8x512xf32>
    %5 = arith.addf %2, %4 : vector<8x512xf32>
    %cst_5 = arith.constant 0.000000e+00 : f32
    %6 = vector.broadcast %cst_5 : f32 to vector<8x512xf32>
    %7 = arith.maximumf %5, %6 : vector<8x512xf32>
    %8 = arith.truncf %7 : vector<8x512xf32> to vector<8x512xbf16>
    %c0_6 = arith.constant 0 : index
    %c0_7 = arith.constant 0 : index
    %9 = vector.load %arg5[%c0_6, %c0_7] : memref<512x128xbf16, #tpu.memory_space<vmem>>, vector<512x128xbf16>
    %cst_8 = arith.constant dense<0.000000e+00> : vector<8x128xf32>
    %10 = tpu.matmul %8, %9, %cst_8 {dimension_numbers = #tpu.dot_dimension_numbers<[1], [0], [0], [1], [0, 0, 1, 1], [], []>} : vector<8x512xbf16>, vector<512x128xbf16>, vector<8x128xf32> -> vector<8x128xf32>
    %c0_9 = arith.constant 0 : index
    %c0_10 = arith.constant 0 : index
    %11 = vector.load %arg6[%c0_9, %c0_10] : memref<1x128xf32, #tpu.memory_space<vmem>>, vector<1x128xf32>
    %12 = vector.broadcast %11 : vector<1x128xf32> to vector<8x128xf32>
    %13 = arith.addf %10, %12 : vector<8x128xf32>
    %cst_11 = arith.constant 0.000000e+00 : f32
    %14 = vector.broadcast %cst_11 : f32 to vector<8x128xf32>
    %15 = arith.maximumf %13, %14 : vector<8x128xf32>
    %16 = arith.truncf %15 : vector<8x128xf32> to vector<8x128xbf16>
    %c0_12 = arith.constant 0 : index
    %c0_13 = arith.constant 0 : index
    %17 = vector.load %arg7[%c0_12, %c0_13] : memref<128x32xbf16, #tpu.memory_space<vmem>>, vector<128x32xbf16>
    %cst_14 = arith.constant dense<0.000000e+00> : vector<8x32xf32>
    %18 = tpu.matmul %16, %17, %cst_14 {dimension_numbers = #tpu.dot_dimension_numbers<[1], [0], [0], [1], [0, 0, 1, 1], [], []>} : vector<8x128xbf16>, vector<128x32xbf16>, vector<8x32xf32> -> vector<8x32xf32>
    %c0_15 = arith.constant 0 : index
    %c0_16 = arith.constant 0 : index
    %19 = vector.load %arg8[%c0_15, %c0_16] : memref<1x32xf32, #tpu.memory_space<vmem>>, vector<1x32xf32>
    %20 = vector.broadcast %19 : vector<1x32xf32> to vector<8x32xf32>
    %21 = arith.addf %18, %20 : vector<8x32xf32>
    %cst_17 = arith.constant 0.000000e+00 : f32
    %22 = vector.broadcast %cst_17 : f32 to vector<8x32xf32>
    %23 = arith.maximumf %21, %22 : vector<8x32xf32>
    %24 = arith.truncf %23 : vector<8x32xf32> to vector<8x32xbf16>
    %c0_18 = arith.constant 0 : index
    %c0_19 = arith.constant 0 : index
    %25 = vector.load %arg9[%c0_18, %c0_19] : memref<32x8xbf16, #tpu.memory_space<vmem>>, vector<32x8xbf16>
    %cst_20 = arith.constant dense<0.000000e+00> : vector<8x8xf32>
    %26 = tpu.matmul %24, %25, %cst_20 {dimension_numbers = #tpu.dot_dimension_numbers<[1], [0], [0], [1], [0, 0, 1, 1], [], []>} : vector<8x32xbf16>, vector<32x8xbf16>, vector<8x8xf32> -> vector<8x8xf32>
    %c0_21 = arith.constant 0 : index
    %c0_22 = arith.constant 0 : index
    %27 = vector.load %arg10[%c0_21, %c0_22] : memref<1x8xf32, #tpu.memory_space<vmem>>, vector<1x8xf32>
    %28 = vector.broadcast %27 : vector<1x8xf32> to vector<8x8xf32>
    %29 = arith.addf %26, %28 : vector<8x8xf32>
    %cst_23 = arith.constant 0.000000e+00 : f32
    %30 = vector.broadcast %cst_23 : f32 to vector<8x8xf32>
    %31 = arith.maximumf %29, %30 : vector<8x8xf32>
    %c0_24 = arith.constant 0 : index
    %c0_25 = arith.constant 0 : index
    %32 = vector.load %arg2[%c0_24, %c0_25] : memref<8x8xf32, #tpu.memory_space<vmem>>, vector<8x8xf32>
    %33 = tpu.concatenate %31, %32 in 1 : vector<8x8xf32>, vector<8x8xf32> -> vector<8x16xf32>
    %34 = arith.truncf %33 : vector<8x16xf32> to vector<8x16xbf16>
    %c0_26 = arith.constant 0 : index
    %c0_27 = arith.constant 0 : index
    %35 = vector.load %arg11[%c0_26, %c0_27] : memref<16x128xbf16, #tpu.memory_space<vmem>>, vector<16x128xbf16>
    %cst_28 = arith.constant dense<0.000000e+00> : vector<8x128xf32>
    %36 = tpu.matmul %34, %35, %cst_28 {dimension_numbers = #tpu.dot_dimension_numbers<[1], [0], [0], [1], [0, 0, 1, 1], [], []>} : vector<8x16xbf16>, vector<16x128xbf16>, vector<8x128xf32> -> vector<8x128xf32>
    %c0_29 = arith.constant 0 : index
    %c0_30 = arith.constant 0 : index
    %37 = vector.load %arg12[%c0_29, %c0_30] : memref<1x128xf32, #tpu.memory_space<vmem>>, vector<1x128xf32>
    %38 = vector.broadcast %37 : vector<1x128xf32> to vector<8x128xf32>
    %39 = arith.addf %36, %38 : vector<8x128xf32>
    %cst_31 = arith.constant 0.000000e+00 : f32
    %40 = vector.broadcast %cst_31 : f32 to vector<8x128xf32>
    %41 = arith.maximumf %39, %40 : vector<8x128xf32>
    %42 = arith.truncf %41 : vector<8x128xf32> to vector<8x128xbf16>
    %c0_32 = arith.constant 0 : index
    %c0_33 = arith.constant 0 : index
    %43 = vector.load %arg13[%c0_32, %c0_33] : memref<128x64xbf16, #tpu.memory_space<vmem>>, vector<128x64xbf16>
    %cst_34 = arith.constant dense<0.000000e+00> : vector<8x64xf32>
    %44 = tpu.matmul %42, %43, %cst_34 {dimension_numbers = #tpu.dot_dimension_numbers<[1], [0], [0], [1], [0, 0, 1, 1], [], []>} : vector<8x128xbf16>, vector<128x64xbf16>, vector<8x64xf32> -> vector<8x64xf32>
    %c0_35 = arith.constant 0 : index
    %c0_36 = arith.constant 0 : index
    %45 = vector.load %arg14[%c0_35, %c0_36] : memref<1x64xf32, #tpu.memory_space<vmem>>, vector<1x64xf32>
    %46 = vector.broadcast %45 : vector<1x64xf32> to vector<8x64xf32>
    %47 = arith.addf %44, %46 : vector<8x64xf32>
    %cst_37 = arith.constant 0.000000e+00 : f32
    %48 = vector.broadcast %cst_37 : f32 to vector<8x64xf32>
    %49 = arith.maximumf %47, %48 : vector<8x64xf32>
    %c0_38 = arith.constant 0 : index
    %c0_39 = arith.constant 0 : index
    %50 = vector.load %arg15[%c0_38, %c0_39] : memref<1x64xf32, #tpu.memory_space<vmem>>, vector<1x64xf32>
    %51 = vector.broadcast %50 : vector<1x64xf32> to vector<8x64xf32>
    %52 = arith.mulf %49, %51 : vector<8x64xf32>
    %53 = vector.extract_strided_slice %52 {offsets = [0, 0], sizes = [8, 32], strides = [1, 1]} : vector<8x64xf32> to vector<8x32xf32>
    %cst_40 = arith.constant dense<0.000000e+00> : vector<8xf32>
    %54 = vector.multi_reduction <add>, %53, %cst_40 [1] : vector<8x32xf32> to vector<8xf32>
    %55 = vector.shape_cast %54 : vector<8xf32> to vector<8x1xf32>
    %56 = vector.extract_strided_slice %52 {offsets = [0, 32], sizes = [8, 32], strides = [1, 1]} : vector<8x64xf32> to vector<8x32xf32>
    %cst_41 = arith.constant dense<0.000000e+00> : vector<8xf32>
    %57 = vector.multi_reduction <add>, %56, %cst_41 [1] : vector<8x32xf32> to vector<8xf32>
    %58 = vector.shape_cast %57 : vector<8xf32> to vector<8x1xf32>
    %59 = tpu.concatenate %55, %58 in 1 : vector<8x1xf32>, vector<8x1xf32> -> vector<8x2xf32>
    %c0_42 = arith.constant 0 : index
    %c0_43 = arith.constant 0 : index
    %60 = vector.load %arg16[%c0_42, %c0_43] : memref<1x2xf32, #tpu.memory_space<vmem>>, vector<1x2xf32>
    %61 = vector.broadcast %60 : vector<1x2xf32> to vector<8x2xf32>
    %62 = arith.addf %59, %61 : vector<8x2xf32>
    %c0_44 = arith.constant 0 : index
    %c0_45 = arith.constant 0 : index
    %63 = vector.load %arg17[%c0_44, %c0_45] : memref<8x2xf32, #tpu.memory_space<vmem>>, vector<8x2xf32>
    tpu.vector_store %arg17[%c0_44, %c0_45], %62 {strides = array<i32>} : memref<8x2xf32, #tpu.memory_space<vmem>>, vector<8x2xf32>,
    return
  }
  func.func @transform_0(%arg0: i32) -> (i32, i32) {
    %c0_i32 = arith.constant 0 : i32
    %c0_i32_0 = arith.constant 0 : i32
    return %arg0, %c0_i32 : i32, i32
  }
  func.func @transform_1(%arg0: i32) -> (i32, i32) {
    %c0_i32 = arith.constant 0 : i32
    %c0_i32_0 = arith.constant 0 : i32
    return %arg0, %c0_i32 : i32, i32
  }
  func.func @transform_2(%arg0: i32) -> (i32, i32) {
    %c0_i32 = arith.constant 0 : i32
    %c0_i32_0 = arith.constant 0 : i32
    %c0_i32_1 = arith.constant 0 : i32
    return %c0_i32, %c0_i32_0 : i32, i32
  }
  func.func @transform_3(%arg0: i32) -> (i32, i32) {
    %c0_i32 = arith.constant 0 : i32
    %c0_i32_0 = arith.constant 0 : i32
    %c0_i32_1 = arith.constant 0 : i32
    return %c0_i32, %c0_i32_0 : i32, i32
  }
  func.func @transform_4(%arg0: i32) -> (i32, i32) {
    %c0_i32 = arith.constant 0 : i32
    %c0_i32_0 = arith.constant 0 : i32
    %c0_i32_1 = arith.constant 0 : i32
    return %c0_i32, %c0_i32_0 : i32, i32
  }
  func.func @transform_5(%arg0: i32) -> (i32, i32) {
    %c0_i32 = arith.constant 0 : i32
    %c0_i32_0 = arith.constant 0 : i32
    %c0_i32_1 = arith.constant 0 : i32
    return %c0_i32, %c0_i32_0 : i32, i32
  }
  func.func @transform_6(%arg0: i32) -> (i32, i32) {
    %c0_i32 = arith.constant 0 : i32
    %c0_i32_0 = arith.constant 0 : i32
    %c0_i32_1 = arith.constant 0 : i32
    return %c0_i32, %c0_i32_0 : i32, i32
  }
  func.func @transform_7(%arg0: i32) -> (i32, i32) {
    %c0_i32 = arith.constant 0 : i32
    %c0_i32_0 = arith.constant 0 : i32
    %c0_i32_1 = arith.constant 0 : i32
    return %c0_i32, %c0_i32_0 : i32, i32
  }
  func.func @transform_8(%arg0: i32) -> (i32, i32) {
    %c0_i32 = arith.constant 0 : i32
    %c0_i32_0 = arith.constant 0 : i32
    %c0_i32_1 = arith.constant 0 : i32
    return %c0_i32, %c0_i32_0 : i32, i32
  }
  func.func @transform_9(%arg0: i32) -> (i32, i32) {
    %c0_i32 = arith.constant 0 : i32
    %c0_i32_0 = arith.constant 0 : i32
    %c0_i32_1 = arith.constant 0 : i32
    return %c0_i32, %c0_i32_0 : i32, i32
  }
  func.func @transform_10(%arg0: i32) -> (i32, i32) {
    %c0_i32 = arith.constant 0 : i32
    %c0_i32_0 = arith.constant 0 : i32
    %c0_i32_1 = arith.constant 0 : i32
    return %c0_i32, %c0_i32_0 : i32, i32
  }
  func.func @transform_11(%arg0: i32) -> (i32, i32) {
    %c0_i32 = arith.constant 0 : i32
    %c0_i32_0 = arith.constant 0 : i32
    %c0_i32_1 = arith.constant 0 : i32
    return %c0_i32, %c0_i32_0 : i32, i32
  }
  func.func @transform_12(%arg0: i32) -> (i32, i32) {
    %c0_i32 = arith.constant 0 : i32
    %c0_i32_0 = arith.constant 0 : i32
    %c0_i32_1 = arith.constant 0 : i32
    return %c0_i32, %c0_i32_0 : i32, i32
  }
  func.func @transform_13(%arg0: i32) -> (i32, i32) {
    %c0_i32 = arith.constant 0 : i32
    %c0_i32_0 = arith.constant 0 : i32
    %c0_i32_1 = arith.constant 0 : i32
    return %c0_i32, %c0_i32_0 : i32, i32
  }
  func.func @transform_14(%arg0: i32) -> (i32, i32) {
    %c0_i32 = arith.constant 0 : i32
    %c0_i32_0 = arith.constant 0 : i32
    %c0_i32_1 = arith.constant 0 : i32
    return %c0_i32, %c0_i32_0 : i32, i32
  }
  func.func @transform_15(%arg0: i32) -> (i32, i32) {
    %c0_i32 = arith.constant 0 : i32
    %c0_i32_0 = arith.constant 0 : i32
    %c0_i32_1 = arith.constant 0 : i32
    return %c0_i32, %c0_i32_0 : i32, i32
  }
  func.func @transform_16(%arg0: i32) -> (i32, i32) {
    %c0_i32 = arith.constant 0 : i32
    %c0_i32_0 = arith.constant 0 : i32
    return %arg0, %c0_i32 : i32, i32
  }
}

</mosaic_0001>

<bundles_post_ra>
// kernel: critic_forward.1
= control target key start
LH: loop header
LB: loop body
LE: loop exit
PB: predicated region body
PF: predicated region fallthrough
CT: control target
= control target key end

     0   :  { %s4030_s0 = inlined_call_operand.vmem [shape: bf16[8,1024], index: 0, kind: input, shape index: {}]   ;;  %s4031_s1 = inlined_call_operand.vmem [shape: f32[8,8], index: 1, kind: input, shape index: {}]   ;;  %s4032_s2 = inlined_call_operand.hbm [shape: bf16[1024,512], index: 2, kind: input, shape index: {}]   ;;  %s4033_s3 = inlined_call_operand.vmem [shape: f32[1,512], index: 3, kind: input, shape index: {}]   ;;  %s4034_s4 = inlined_call_operand.vmem [shape: bf16[512,128], index: 4, kind: input, shape index: {}]   ;;  %s4035_s5 = inlined_call_operand.vmem [shape: f32[1,128], index: 5, kind: input, shape index: {}]   ;;  %s4036_s6 = inlined_call_operand.vmem [shape: bf16[128,32], index: 6, kind: input, shape index: {}]   ;;  %s4037_s7 = inlined_call_operand.vmem [shape: f32[1,32], index: 7, kind: input, shape index: {}]   ;;  %s4038_s8 = inlined_call_operand.vmem [shape: bf16[32,8], index: 8, kind: input, shape index: {}]   ;;  %s4039_s9 = inlined_call_operand.vmem [shape: f32[1,8], index: 9, kind: input, shape index: {}]   ;;  %s4040_s10 = inlined_call_operand.vmem [shape: bf16[16,128], index: 10, kind: input, shape index: {}]   ;;  %s4041_s11 = inlined_call_operand.vmem [shape: f32[1,128], index: 11, kind: input, shape index: {}]   ;;  %s4042_s12 = inlined_call_operand.vmem [shape: bf16[128,64], index: 12, kind: input, shape index: {}]   ;;  %s4043_s13 = inlined_call_operand.vmem [shape: f32[1,64], index: 13, kind: input, shape index: {}]   ;;  %s4044_s14 = inlined_call_operand.vmem [shape: f32[1,64], index: 14, kind: input, shape index: {}]   ;;  %s4045_s15 = inlined_call_operand.vmem [shape: f32[1,2], index: 15, kind: input, shape index: {}]   ;;  %s4046_s16 = inlined_call_operand.vmem [shape: f32[8,2], index: 16, kind: output, shape index: {}]  }
   0x1   :  { %4048 = sst [smem:[#allocation5_spill]] %s4030_s0 }
   0x2   :  { %21 = vsyncpa [#allocation3], 0  ;;  %s3683_s21 = smov [#allocation2]   ;;  %s3659_s25 = scalar_lea.hbm %s4032_s2, 32768 }
   0x3   :  { %s31_s22 = sshll.u32 %s3683_s21, 4  ;;  %p3660_p0 = scmp.ne.s32.totalorder %s4032_s2, %s3659_s25  ;;  %s32_s22 = int_to_ptr.vmem [resolvable:$true] %s31_s22 }
   0x4   :  { %p3663_p1 = scmp.lt.u32.totalorder %s3659_s25, %s4032_s2 }
   0x6   :  { %p3665_p2 = pnand %p3663_p1, %p3660_p0 }
   0x8   :  { %3668 = shalt.err (!%p3665_p2)
}
   0x9   :  { %s3669_s30 = scalar_lea.vmem %s32_s22, 32768  ;;  %p3674_p4 = scmp.lt.s32.totalorder %s32_s22, %s32_s22 }
   0xa   :  { %p3670_p3 = scmp.ne.s32.totalorder %s32_s22, %s3669_s30  ;;  %p3675_p5 = scmp.lt.s32.totalorder %s3669_s30, %s3669_s30 }
   0xc   :  { %p3676_p6 = por %p3675_p5, %p3674_p4 }
   0xe   :  { %p3677_p7 = pnand %p3676_p6, %p3670_p3 }
  0x10   :  { %3680 = shalt.err (!%p3677_p7)
}
  0x11   :  { %s3684_s0 = smov 256   ;;  %s3685_s17 = smov 16  }
  0x12   :  { %37 = dma.hbm_to_vmem [thread:$0]  %s4032_s2, 32768, %s32_s22, [#allocation3], %s3684_s0, %s3684_s0, %s3685_s17  }
  0x13   :  { %3681 = dma.done.wait [#allocation3], 32768  }
  0x14   :  { %3682 = vsyncadd [#allocation3], 4294934528  ;;  %v3216_v0 = vld [vmem:[#allocation2 + $0x4] ss:$16 sps:$4 sm:$0xff]   ;;  %v3218_v1 = vld [vmem:[#allocation2 + $0xc] ss:$16 sps:$4 sm:$0xff]  }
  0x15   :  { %1658 = vmatprep.subr.bf16.mxu0 %v3216_v0  ;;  %v3220_v2 = vld [vmem:[#allocation2] ss:$16 sps:$4 sm:$0xff]   ;;  %v3221_v3 = vld [vmem:[#allocation2 + $0x8] ss:$16 sps:$4 sm:$0xff]   ;;  %1822 = vmatprep.subr.bf16.mxu1 %v3218_v1  ;;  %v3222_v4 = vld [vmem:[#allocation2 + $0x24] ss:$16 sps:$4 sm:$0xff]  }
  0x16   :  { %1659 = vmatpush1.bf16.msra.mxu0 %v3220_v2  ;;  %1823 = vmatpush1.bf16.msra.mxu1 %v3221_v3  ;;  %v3224_v5 = vld [vmem:[#allocation2 + $0x2c] ss:$16 sps:$4 sm:$0xff]   ;;  %v3226_v6 = vld [vmem:[#allocation2 + $0x20] ss:$16 sps:$4 sm:$0xff]   ;;  %v3227_v7 = vld [vmem:[#allocation2 + $0x28] ss:$16 sps:$4 sm:$0xff]  }
  0x17   :  { %1660 = vmatprep.subr.bf16.mxu0 %v3222_v4  ;;  %1824 = vmatprep.subr.bf16.mxu1 %v3224_v5  ;;  %v3228_v8 = vld [vmem:[#allocation2 + $0x44] ss:$16 sps:$4 sm:$0xff]   ;;  %v3230_v9 = vld [vmem:[#allocation2 + $0x4c] ss:$16 sps:$4 sm:$0xff]   ;;  %v3232_v10 = vld [vmem:[#allocation2 + $0x40] ss:$16 sps:$4 sm:$0xff]  }
  0x18   :  { %v3233_v11 = vld [vmem:[#allocation2 + $0x48] ss:$16 sps:$4 sm:$0xff]   ;;  %v3234_v12 = vld [vmem:[#allocation2 + $0x64] ss:$16 sps:$4 sm:$0xff]   ;;  %v3236_v13 = vld [vmem:[#allocation2 + $0x6c] ss:$16 sps:$4 sm:$0xff]  }
  0x19   :  { %v3238_v14 = vld [vmem:[#allocation2 + $0x60] ss:$16 sps:$4 sm:$0xff]   ;;  %v3239_v15 = vld [vmem:[#allocation2 + $0x68] ss:$16 sps:$4 sm:$0xff]   ;;  %v3240_v16 = vld [vmem:[#allocation2 + $0x84] ss:$16 sps:$4 sm:$0xff]  }
  0x1a   :  { %1661 = vmatpush1.bf16.msra.mxu0 %v3226_v6  ;;  %1825 = vmatpush1.bf16.msra.mxu1 %v3227_v7  ;;  %v3242_v17 = vld [vmem:[#allocation2 + $0x8c] ss:$16 sps:$4 sm:$0xff]   ;;  %v3244_v18 = vld [vmem:[#allocation2 + $0x80] ss:$16 sps:$4 sm:$0xff]   ;;  %v3245_v19 = vld [vmem:[#allocation2 + $0x88] ss:$16 sps:$4 sm:$0xff]  }
  0x1b   :  { %1662 = vmatprep.subr.bf16.mxu0 %v3228_v8  ;;  %1826 = vmatprep.subr.bf16.mxu1 %v3230_v9  ;;  %v3246_v20 = vld [vmem:[#allocation2 + $0xa4] ss:$16 sps:$4 sm:$0xff]   ;;  %v3248_v21 = vld [vmem:[#allocation2 + $0xac] ss:$16 sps:$4 sm:$0xff]   ;;  %v3250_v22 = vld [vmem:[#allocation2 + $0xa0] ss:$16 sps:$4 sm:$0xff]  }
  0x1c   :  { %v3251_v23 = vld [vmem:[#allocation2 + $0xa8] ss:$16 sps:$4 sm:$0xff]   ;;  %v3252_v24 = vld [vmem:[#allocation2 + $0xc4] ss:$16 sps:$4 sm:$0xff]   ;;  %v3254_v25 = vld [vmem:[#allocation2 + $0xcc] ss:$16 sps:$4 sm:$0xff]  }
  0x1d   :  { %v3256_v26 = vld [vmem:[#allocation2 + $0xc0] ss:$16 sps:$4 sm:$0xff]   ;;  %v3257_v27 = vld [vmem:[#allocation2 + $0xc8] ss:$16 sps:$4 sm:$0xff]   ;;  %v3258_v28 = vld [vmem:[#allocation2 + $0xe4] ss:$16 sps:$4 sm:$0xff]  }
  0x1e   :  { %1663 = vmatpush1.bf16.msra.mxu0 %v3232_v10  ;;  %1827 = vmatpush1.bf16.msra.mxu1 %v3233_v11  ;;  %v3260_v29 = vld [vmem:[#allocation2 + $0xec] ss:$16 sps:$4 sm:$0xff]   ;;  %v3262_v30 = vld [vmem:[#allocation2 + $0xe0] ss:$16 sps:$4 sm:$0xff]   ;;  %v3263_v31 = vld [vmem:[#allocation2 + $0xe8] ss:$16 sps:$4 sm:$0xff]  }
  0x1f   :  { %1664 = vmatprep.subr.bf16.mxu0 %v3234_v12  ;;  %1828 = vmatprep.subr.bf16.mxu1 %v3236_v13  ;;  %v3264_v32 = vld [vmem:[#allocation2 + $0x104] ss:$16 sps:$4 sm:$0xff]   ;;  %v3266_v33 = vld [vmem:[#allocation2 + $0x10c] ss:$16 sps:$4 sm:$0xff]   ;;  %v3268_v34 = vld [vmem:[#allocation2 + $0x100] ss:$16 sps:$4 sm:$0xff]  }
  0x20   :  { %v3269_v35 = vld [vmem:[#allocation2 + $0x108] ss:$16 sps:$4 sm:$0xff]   ;;  %v3270_v36 = vld [vmem:[#allocation2 + $0x124] ss:$16 sps:$4 sm:$0xff]   ;;  %v3272_v37 = vld [vmem:[#allocation2 + $0x12c] ss:$16 sps:$4 sm:$0xff]  }
  0x21   :  { %v3274_v38 = vld [vmem:[#allocation2 + $0x120] ss:$16 sps:$4 sm:$0xff]   ;;  %v3275_v39 = vld [vmem:[#allocation2 + $0x128] ss:$16 sps:$4 sm:$0xff]   ;;  %v3276_v40 = vld [vmem:[#allocation2 + $0x144] ss:$16 sps:$4 sm:$0xff]  }
  0x22   :  { %1665 = vmatpush1.bf16.msra.mxu0 %v3238_v14  ;;  %1829 = vmatpush1.bf16.msra.mxu1 %v3239_v15  ;;  %v3278_v41 = vld [vmem:[#allocation2 + $0x14c] ss:$16 sps:$4 sm:$0xff]   ;;  %v3280_v42 = vld [vmem:[#allocation2 + $0x140] ss:$16 sps:$4 sm:$0xff]   ;;  %v3281_v43 = vld [vmem:[#allocation2 + $0x148] ss:$16 sps:$4 sm:$0xff]  }
  0x23   :  { %1666 = vmatprep.subr.bf16.mxu0 %v3240_v16  ;;  %1830 = vmatprep.subr.bf16.mxu1 %v3242_v17  ;;  %v3282_v44 = vld [vmem:[#allocation2 + $0x164] ss:$16 sps:$4 sm:$0xff]   ;;  %v3284_v45 = vld [vmem:[#allocation2 + $0x16c] ss:$16 sps:$4 sm:$0xff]   ;;  %s4049_s21 = sld [smem:[#allocation5_spill]]  ;;  %vm3687_vm0 = vmmov 0  }
  0x24   :  { %v3286_v47 = vld [vmem:[#allocation2 + $0x160] ss:$16 sps:$4 sm:$0xff]   ;;  %v3287_v49 = vld [vmem:[#allocation2 + $0x168] ss:$16 sps:$4 sm:$0xff]   ;;  %v3288_v50 = vld [vmem:[#allocation2 + $0x184] ss:$16 sps:$4 sm:$0xff]  }
  0x25   :  { %v3290_v51 = vld [vmem:[#allocation2 + $0x18c] ss:$16 sps:$4 sm:$0xff]   ;;  %v3292_v52 = vld [vmem:[#allocation2 + $0x180] ss:$16 sps:$4 sm:$0xff]   ;;  %v3293_v53 = vld [vmem:[#allocation2 + $0x188] ss:$16 sps:$4 sm:$0xff]  }
  0x26   :  { %1667 = vmatpush1.bf16.msra.mxu0 %v3244_v18  ;;  %1831 = vmatpush1.bf16.msra.mxu1 %v3245_v19  ;;  %v3294_v54 = vld [vmem:[#allocation2 + $0x1a4] ss:$16 sps:$4 sm:$0xff]   ;;  %v3296_v55 = vld [vmem:[#allocation2 + $0x1ac] ss:$16 sps:$4 sm:$0xff]   ;;  %v3298_v56 = vld [vmem:[#allocation2 + $0x1a0] ss:$16 sps:$4 sm:$0xff]  }
  0x27   :  { %1668 = vmatprep.subr.bf16.mxu0 %v3246_v20  ;;  %1832 = vmatprep.subr.bf16.mxu1 %v3248_v21  ;;  %v3299_v57 = vld [vmem:[#allocation2 + $0x1a8] ss:$16 sps:$4 sm:$0xff]   ;;  %v3300_v58 = vld [vmem:[#allocation2 + $0x1c4] ss:$16 sps:$4 sm:$0xff]   ;;  %v3302_v59 = vld [vmem:[#allocation2 + $0x1cc] ss:$16 sps:$4 sm:$0xff]  }
  0x28   :  { %v3304_v60 = vld [vmem:[#allocation2 + $0x1c0] ss:$16 sps:$4 sm:$0xff]   ;;  %v3305_v61 = vld [vmem:[#allocation2 + $0x1c8] ss:$16 sps:$4 sm:$0xff]   ;;  %v3306_v62 = vld [vmem:[#allocation2 + $0x1e4] ss:$16 sps:$4 sm:$0xff]  }
  0x29   :  { %v68_v46 = vld [vmem:[%s4049_s21] sm:$0xff]  ;;  %v3308_v63 = vld [vmem:[#allocation2 + $0x1ec] ss:$16 sps:$4 sm:$0xff]   ;;  %v3311_v1 = vld [vmem:[#allocation2 + $0x1e8] ss:$16 sps:$4 sm:$0xff]   ;;  %s3688_s17 = smov 8  }
  0x2a   :  { %1669 = vmatpush1.bf16.msra.mxu0 %v3250_v22  ;;  %1833 = vmatpush1.bf16.msra.mxu1 %v3251_v23  ;;  %v2737_v48 = vcombine.high %v68_v46, %v68_v46  ;;  %v3310_v0 = vld [vmem:[#allocation2 + $0x1e0] ss:$16 sps:$4 sm:$0xff]   ;;  %v3316_v2 = vld [vmem:[#allocation2 + $0x204] ss:$16 sps:$4 sm:$0xff]   ;;  %v3319_v3 = vld [vmem:[#allocation2 + $0x20c] ss:$16 sps:$4 sm:$0xff]   ;;  %v2736_v4 = vcombine.low %v68_v46, %v68_v46 }
  0x2b   :  { %1670 = vmatprep.subr.bf16.mxu0 %v3252_v24  ;;  %1834 = vmatprep.subr.bf16.mxu1 %v3254_v25  ;;  %v3314_v5 = vld [vmem:[#allocation2 + $0x200] ss:$16 sps:$4 sm:$0xff]   ;;  %v3317_v6 = vld [vmem:[#allocation2 + $0x208] ss:$16 sps:$4 sm:$0xff]   ;;  %v3322_v7 = vld [vmem:[#allocation2 + $0x224] ss:$16 sps:$4 sm:$0xff]  }
  0x2c   :  { %1690 = vmatprep.mubr.bf16.mxu0 %v2737_v48  ;;  %1854 = vmatprep.mubr.bf16.mxu1 %v2737_v48  ;;  %v3325_v8 = vld [vmem:[#allocation2 + $0x22c] ss:$16 sps:$4 sm:$0xff]   ;;  %v3320_v9 = vld [vmem:[#allocation2 + $0x220] ss:$16 sps:$4 sm:$0xff]   ;;  %v3323_v10 = vld [vmem:[#allocation2 + $0x228] ss:$16 sps:$4 sm:$0xff]  }
  0x2d   :  { %v3328_v11 = vld [vmem:[#allocation2 + $0x244] ss:$16 sps:$4 sm:$0xff]   ;;  %v3331_v12 = vld [vmem:[#allocation2 + $0x24c] ss:$16 sps:$4 sm:$0xff]   ;;  %v3326_v13 = vld [vmem:[#allocation2 + $0x240] ss:$16 sps:$4 sm:$0xff]  }
  0x2e   :  { %1671 = vmatpush1.bf16.msra.mxu0 %v3256_v26  ;;  %1835 = vmatpush1.bf16.msra.mxu1 %v3257_v27  ;;  %v3329_v14 = vld [vmem:[#allocation2 + $0x248] ss:$16 sps:$4 sm:$0xff]   ;;  %v3334_v15 = vld [vmem:[#allocation2 + $0x264] ss:$16 sps:$4 sm:$0xff]   ;;  %v3337_v16 = vld [vmem:[#allocation2 + $0x26c] ss:$16 sps:$4 sm:$0xff]  }
  0x2f   :  { %1672 = vmatprep.subr.bf16.mxu0 %v3258_v28  ;;  %1836 = vmatprep.subr.bf16.mxu1 %v3260_v29  ;;  %v3332_v17 = vld [vmem:[#allocation2 + $0x260] ss:$16 sps:$4 sm:$0xff]   ;;  %v3335_v18 = vld [vmem:[#allocation2 + $0x268] ss:$16 sps:$4 sm:$0xff]   ;;  %v3340_v19 = vld [vmem:[#allocation2 + $0x284] ss:$16 sps:$4 sm:$0xff]  }
  0x30   :  { %v3343_v20 = vld [vmem:[#allocation2 + $0x28c] ss:$16 sps:$4 sm:$0xff]   ;;  %v3338_v21 = vld [vmem:[#allocation2 + $0x280] ss:$16 sps:$4 sm:$0xff]   ;;  %v3341_v22 = vld [vmem:[#allocation2 + $0x288] ss:$16 sps:$4 sm:$0xff]  }
  0x31   :  { %v3346_v23 = vld [vmem:[#allocation2 + $0x2a4] ss:$16 sps:$4 sm:$0xff]   ;;  %v3349_v24 = vld [vmem:[#allocation2 + $0x2ac] ss:$16 sps:$4 sm:$0xff]   ;;  %v3344_v25 = vld [vmem:[#allocation2 + $0x2a0] ss:$16 sps:$4 sm:$0xff]  }
  0x32   :  { %1673 = vmatpush1.bf16.msra.mxu0 %v3262_v30  ;;  %1837 = vmatpush1.bf16.msra.mxu1 %v3263_v31  ;;  %v3347_v26 = vld [vmem:[#allocation2 + $0x2a8] ss:$16 sps:$4 sm:$0xff]   ;;  %v3352_v27 = vld [vmem:[#allocation2 + $0x2c4] ss:$16 sps:$4 sm:$0xff]   ;;  %v3355_v28 = vld [vmem:[#allocation2 + $0x2cc] ss:$16 sps:$4 sm:$0xff]  }
  0x33   :  { %1674 = vmatprep.subr.bf16.mxu0 %v3264_v32  ;;  %1838 = vmatprep.subr.bf16.mxu1 %v3266_v33  ;;  %v3793_v29 = vld [vmem:[%s4049_s21 + $0x8] sm:$0xff]  ;;  %v3350_v31 = vld [vmem:[#allocation2 + $0x2c0] ss:$16 sps:$4 sm:$0xff]   ;;  %v3358_v33 = vld [vmem:[#allocation2 + $0x2e4] ss:$16 sps:$4 sm:$0xff]   ;;  %vm2475_vm1 = vcmask 261120  }
  0x34   :  { %v2739_v30 = vcombine.high %v3793_v29, %v3793_v29  ;;  %v3353_v32 = vld [vmem:[#allocation2 + $0x2c8] ss:$16 sps:$4 sm:$0xff]   ;;  %v3379_v46 = vld [vmem:[#allocation2 + $0x34c] ss:$16 sps:$4 sm:$0xff]   ;;  %vm2525_vm2 = vcmask 64512   ;;  %vm2543_vm3 = vcmask 130048  }
  0x35   :  { %v3377_v48 = vld [vmem:[#allocation2 + $0x348] ss:$16 sps:$4 sm:$0xff]   ;;  %vm2719_vm4 = vcmask 7168   ;;  %vm2729_vm5 = vcmask 15360  }
  0x36   :  { %1675 = vmatpush1.bf16.msra.mxu0 %v3268_v34  ;;  %1839 = vmatpush1.bf16.msra.mxu1 %v3269_v35  ;;  %v3361_v34 = vld [vmem:[#allocation2 + $0x2ec] ss:$16 sps:$4 sm:$0xff]   ;;  %v3356_v35 = vld [vmem:[#allocation2 + $0x2e0] ss:$16 sps:$4 sm:$0xff]  }
  0x37   :  { %1676 = vmatprep.subr.bf16.mxu0 %v3270_v36  ;;  %1840 = vmatprep.subr.bf16.mxu1 %v3272_v37  ;;  %v3359_v36 = vld [vmem:[#allocation2 + $0x2e8] ss:$16 sps:$4 sm:$0xff]   ;;  %v3364_v37 = vld [vmem:[#allocation2 + $0x304] ss:$16 sps:$4 sm:$0xff]  }
  0x3a   :  { %1677 = vmatpush1.bf16.msra.mxu0 %v3274_v38  ;;  %1841 = vmatpush1.bf16.msra.mxu1 %v3275_v39  ;;  %v3367_v38 = vld [vmem:[#allocation2 + $0x30c] ss:$16 sps:$4 sm:$0xff]   ;;  %v3362_v39 = vld [vmem:[#allocation2 + $0x300] ss:$16 sps:$4 sm:$0xff]  }
  0x3b   :  { %1678 = vmatprep.subr.bf16.mxu0 %v3276_v40  ;;  %1842 = vmatprep.subr.bf16.mxu1 %v3278_v41  ;;  %v3365_v40 = vld [vmem:[#allocation2 + $0x308] ss:$16 sps:$4 sm:$0xff]   ;;  %v3370_v41 = vld [vmem:[#allocation2 + $0x324] ss:$16 sps:$4 sm:$0xff]  }
  0x3e   :  { %1679 = vmatpush1.bf16.msra.mxu0 %v3280_v42  ;;  %1843 = vmatpush1.bf16.msra.mxu1 %v3281_v43  ;;  %v3373_v42 = vld [vmem:[#allocation2 + $0x32c] ss:$16 sps:$4 sm:$0xff]   ;;  %v3368_v43 = vld [vmem:[#allocation2 + $0x320] ss:$16 sps:$4 sm:$0xff]  }
  0x3f   :  { %1680 = vmatprep.subr.bf16.mxu0 %v3282_v44  ;;  %1844 = vmatprep.subr.bf16.mxu1 %v3284_v45  ;;  %v3371_v44 = vld [vmem:[#allocation2 + $0x328] ss:$16 sps:$4 sm:$0xff]   ;;  %v3376_v45 = vld [vmem:[#allocation2 + $0x344] ss:$16 sps:$4 sm:$0xff]  }
  0x42   :  { %1681 = vmatpush1.bf16.msra.mxu0 %v3286_v47  ;;  %1845 = vmatpush1.bf16.msra.mxu1 %v3287_v49  ;;  %v3374_v47 = vld [vmem:[#allocation2 + $0x340] ss:$16 sps:$4 sm:$0xff]   ;;  %v3382_v49 = vld [vmem:[#allocation2 + $0x364] ss:$16 sps:$4 sm:$0xff]  }
  0x43   :  { %1682 = vmatprep.subr.bf16.mxu0 %v3288_v50  ;;  %1846 = vmatprep.subr.bf16.mxu1 %v3290_v51  ;;  %v3385_v50 = vld [vmem:[#allocation2 + $0x36c] ss:$16 sps:$4 sm:$0xff]   ;;  %v3380_v51 = vld [vmem:[#allocation2 + $0x360] ss:$16 sps:$4 sm:$0xff]  }
  0x46   :  { %1683 = vmatpush1.bf16.msra.mxu0 %v3292_v52  ;;  %1847 = vmatpush1.bf16.msra.mxu1 %v3293_v53  ;;  %v3383_v52 = vld [vmem:[#allocation2 + $0x368] ss:$16 sps:$4 sm:$0xff]   ;;  %v3388_v53 = vld [vmem:[#allocation2 + $0x384] ss:$16 sps:$4 sm:$0xff]  }
  0x47   :  { %1684 = vmatprep.subr.bf16.mxu0 %v3294_v54  ;;  %1848 = vmatprep.subr.bf16.mxu1 %v3296_v55  ;;  %v3391_v54 = vld [vmem:[#allocation2 + $0x38c] ss:$16 sps:$4 sm:$0xff]   ;;  %v3386_v55 = vld [vmem:[#allocation2 + $0x380] ss:$16 sps:$4 sm:$0xff]  }
  0x4a   :  { %1685 = vmatpush1.bf16.msra.mxu0 %v3298_v56  ;;  %1849 = vmatpush1.bf16.msra.mxu1 %v3299_v57  ;;  %v3389_v56 = vld [vmem:[#allocation2 + $0x388] ss:$16 sps:$4 sm:$0xff]   ;;  %v3394_v57 = vld [vmem:[#allocation2 + $0x3a4] ss:$16 sps:$4 sm:$0xff]  }
  0x4b   :  { %1686 = vmatprep.subr.bf16.mxu0 %v3300_v58  ;;  %1850 = vmatprep.subr.bf16.mxu1 %v3302_v59  ;;  %v3397_v58 = vld [vmem:[#allocation2 + $0x3ac] ss:$16 sps:$4 sm:$0xff]   ;;  %v3392_v59 = vld [vmem:[#allocation2 + $0x3a0] ss:$16 sps:$4 sm:$0xff]  }
  0x4e   :  { %1687 = vmatpush1.bf16.msra.mxu0 %v3304_v60  ;;  %1851 = vmatpush1.bf16.msra.mxu1 %v3305_v61  ;;  %v3395_v60 = vld [vmem:[#allocation2 + $0x3a8] ss:$16 sps:$4 sm:$0xff]   ;;  %v3400_v61 = vld [vmem:[#allocation2 + $0x3c4] ss:$16 sps:$4 sm:$0xff]  }
  0x4f   :  { %1688 = vmatprep.subr.bf16.mxu0 %v3306_v62  ;;  %1852 = vmatprep.subr.bf16.mxu1 %v3308_v63  ;;  %v3403_v62 = vld [vmem:[#allocation2 + $0x3cc] ss:$16 sps:$4 sm:$0xff]   ;;  %v3398_v63 = vld [vmem:[#allocation2 + $0x3c0] ss:$16 sps:$4 sm:$0xff]  }
  0x52   :  { %1689 = vmatpush1.bf16.msra.mxu0 %v3310_v0  ;;  %1853 = vmatpush1.bf16.msra.mxu1 %v3311_v1  ;;  %v3401_v0 = vld [vmem:[#allocation2 + $0x3c8] ss:$16 sps:$4 sm:$0xff]   ;;  %v3406_v1 = vld [vmem:[#allocation2 + $0x3e4] ss:$16 sps:$4 sm:$0xff]  }
  0x53   :  { %1699 = vmatprep.subr.bf16.mxu0 %v3316_v2  ;;  %1863 = vmatprep.subr.bf16.mxu1 %v3319_v3  ;;  %v3409_v2 = vld [vmem:[#allocation2 + $0x3ec] ss:$16 sps:$4 sm:$0xff]   ;;  %v3404_v3 = vld [vmem:[#allocation2 + $0x3e0] ss:$16 sps:$4 sm:$0xff]  }
  0x55   :  { %1691 = vmatmul.mubr.bf16.vlgmr.msra.gmra.mrb[0].mxu0 %v2736_v4  ;;  %1855 = vmatmul.mubr.bf16.vlgmr.msra.gmra.mrb[0].mxu1 %v2736_v4  ;;  %v3407_v4 = vld [vmem:[#allocation2 + $0x3e8] ss:$16 sps:$4 sm:$0xff]  }
  0x56   :  { %1700 = vmatpush1.bf16.msra.mxu0 %v3314_v5  ;;  %1864 = vmatpush1.bf16.msra.mxu1 %v3317_v6  ;;  %v3414_v5 = vld [vmem:[#allocation2 + $0x404] ss:$16 sps:$4 sm:$0xff]   ;;  %v3417_v6 = vld [vmem:[#allocation2 + $0x40c] ss:$16 sps:$4 sm:$0xff]  }
  0x57   :  { %1701 = vmatprep.subr.bf16.mxu0 %v3322_v7  ;;  %1865 = vmatprep.subr.bf16.mxu1 %v3325_v8  ;;  %v2738_v7 = vcombine.low %v3793_v29, %v3793_v29  ;;  %v3412_v8 = vld [vmem:[#allocation2 + $0x400] ss:$16 sps:$4 sm:$0xff]   ;;  %v3447_v29 = vld [vmem:[#allocation2 + $0x4ac] ss:$16 sps:$4 sm:$0xff]  }
  0x58   :  { %1731 = vmatprep.mubr.bf16.mxu0 %v2739_v30  ;;  %1895 = vmatprep.mubr.bf16.mxu1 %v2739_v30  ;;  %v3442_v30 = vld [vmem:[#allocation2 + $0x4a0] ss:$16 sps:$4 sm:$0xff]  }
  0x5a   :  { %1702 = vmatpush1.bf16.msra.mxu0 %v3320_v9  ;;  %1866 = vmatpush1.bf16.msra.mxu1 %v3323_v10  ;;  %v3415_v9 = vld [vmem:[#allocation2 + $0x408] ss:$16 sps:$4 sm:$0xff]   ;;  %v3420_v10 = vld [vmem:[#allocation2 + $0x424] ss:$16 sps:$4 sm:$0xff]  }
  0x5b   :  { %1703 = vmatprep.subr.bf16.mxu0 %v3328_v11  ;;  %1867 = vmatprep.subr.bf16.mxu1 %v3331_v12  ;;  %v3802_v11 = vld [vmem:[%s4049_s21 + $0x10] sm:$0xff]  ;;  %v3423_v12 = vld [vmem:[#allocation2 + $0x42c] ss:$16 sps:$4 sm:$0xff]  }
  0x5e   :  { %1704 = vmatpush1.bf16.msra.mxu0 %v3326_v13  ;;  %1868 = vmatpush1.bf16.msra.mxu1 %v3329_v14  ;;  %v2741_v13 = vcombine.high %v3802_v11, %v3802_v11  ;;  %v3418_v14 = vld [vmem:[#allocation2 + $0x420] ss:$16 sps:$4 sm:$0xff]  }
  0x5f   :  { %1705 = vmatprep.subr.bf16.mxu0 %v3334_v15  ;;  %1869 = vmatprep.subr.bf16.mxu1 %v3337_v16  ;;  %v3421_v15 = vld [vmem:[#allocation2 + $0x428] ss:$16 sps:$4 sm:$0xff]   ;;  %v3426_v16 = vld [vmem:[#allocation2 + $0x444] ss:$16 sps:$4 sm:$0xff]  }
  0x62   :  { %1706 = vmatpush1.bf16.msra.mxu0 %v3332_v17  ;;  %1870 = vmatpush1.bf16.msra.mxu1 %v3335_v18  ;;  %v3429_v17 = vld [vmem:[#allocation2 + $0x44c] ss:$16 sps:$4 sm:$0xff]   ;;  %v3424_v18 = vld [vmem:[#allocation2 + $0x440] ss:$16 sps:$4 sm:$0xff]  }
  0x63   :  { %1707 = vmatprep.subr.bf16.mxu0 %v3340_v19  ;;  %1871 = vmatprep.subr.bf16.mxu1 %v3343_v20  ;;  %v3427_v19 = vld [vmem:[#allocation2 + $0x448] ss:$16 sps:$4 sm:$0xff]   ;;  %v3432_v20 = vld [vmem:[#allocation2 + $0x464] ss:$16 sps:$4 sm:$0xff]  }
  0x66   :  { %1708 = vmatpush1.bf16.msra.mxu0 %v3338_v21  ;;  %1872 = vmatpush1.bf16.msra.mxu1 %v3341_v22  ;;  %v3435_v21 = vld [vmem:[#allocation2 + $0x46c] ss:$16 sps:$4 sm:$0xff]   ;;  %v3430_v22 = vld [vmem:[#allocation2 + $0x460] ss:$16 sps:$4 sm:$0xff]  }
  0x67   :  { %1709 = vmatprep.subr.bf16.mxu0 %v3346_v23  ;;  %1873 = vmatprep.subr.bf16.mxu1 %v3349_v24  ;;  %v3433_v23 = vld [vmem:[#allocation2 + $0x468] ss:$16 sps:$4 sm:$0xff]   ;;  %v3438_v24 = vld [vmem:[#allocation2 + $0x484] ss:$16 sps:$4 sm:$0xff]  }
  0x6a   :  { %1710 = vmatpush1.bf16.msra.mxu0 %v3344_v25  ;;  %1874 = vmatpush1.bf16.msra.mxu1 %v3347_v26  ;;  %v3441_v25 = vld [vmem:[#allocation2 + $0x48c] ss:$16 sps:$4 sm:$0xff]   ;;  %v3436_v26 = vld [vmem:[#allocation2 + $0x480] ss:$16 sps:$4 sm:$0xff]  }
  0x6b   :  { %1711 = vmatprep.subr.bf16.mxu0 %v3352_v27  ;;  %1875 = vmatprep.subr.bf16.mxu1 %v3355_v28  ;;  %v3439_v27 = vld [vmem:[#allocation2 + $0x488] ss:$16 sps:$4 sm:$0xff]   ;;  %v3444_v28 = vld [vmem:[#allocation2 + $0x4a4] ss:$16 sps:$4 sm:$0xff]  }
  0x6e   :  { %1712 = vmatpush1.bf16.msra.mxu0 %v3350_v31  ;;  %1876 = vmatpush1.bf16.msra.mxu1 %v3353_v32  ;;  %v3445_v31 = vld [vmem:[#allocation2 + $0x4a8] ss:$16 sps:$4 sm:$0xff]   ;;  %v3450_v32 = vld [vmem:[#allocation2 + $0x4c4] ss:$16 sps:$4 sm:$0xff]  }
  0x6f   :  { %1713 = vmatprep.subr.bf16.mxu0 %v3358_v33  ;;  %1877 = vmatprep.subr.bf16.mxu1 %v3361_v34  ;;  %v3453_v33 = vld [vmem:[#allocation2 + $0x4cc] ss:$16 sps:$4 sm:$0xff]   ;;  %v3448_v34 = vld [vmem:[#allocation2 + $0x4c0] ss:$16 sps:$4 sm:$0xff]  }
  0x72   :  { %1714 = vmatpush1.bf16.msra.mxu0 %v3356_v35  ;;  %1878 = vmatpush1.bf16.msra.mxu1 %v3359_v36  ;;  %v3451_v35 = vld [vmem:[#allocation2 + $0x4c8] ss:$16 sps:$4 sm:$0xff]   ;;  %v3456_v36 = vld [vmem:[#allocation2 + $0x4e4] ss:$16 sps:$4 sm:$0xff]  }
  0x73   :  { %1715 = vmatprep.subr.bf16.mxu0 %v3364_v37  ;;  %1879 = vmatprep.subr.bf16.mxu1 %v3367_v38  ;;  %v3459_v37 = vld [vmem:[#allocation2 + $0x4ec] ss:$16 sps:$4 sm:$0xff]   ;;  %v3454_v38 = vld [vmem:[#allocation2 + $0x4e0] ss:$16 sps:$4 sm:$0xff]  }
  0x76   :  { %1716 = vmatpush1.bf16.msra.mxu0 %v3362_v39  ;;  %1880 = vmatpush1.bf16.msra.mxu1 %v3365_v40  ;;  %v3457_v39 = vld [vmem:[#allocation2 + $0x4e8] ss:$16 sps:$4 sm:$0xff]   ;;  %v3462_v40 = vld [vmem:[#allocation2 + $0x504] ss:$16 sps:$4 sm:$0xff]  }
  0x77   :  { %1717 = vmatprep.subr.bf16.mxu0 %v3370_v41  ;;  %1881 = vmatprep.subr.bf16.mxu1 %v3373_v42  ;;  %v3465_v41 = vld [vmem:[#allocation2 + $0x50c] ss:$16 sps:$4 sm:$0xff]   ;;  %v3460_v42 = vld [vmem:[#allocation2 + $0x500] ss:$16 sps:$4 sm:$0xff]  }
  0x7a   :  { %1718 = vmatpush1.bf16.msra.mxu0 %v3368_v43  ;;  %1882 = vmatpush1.bf16.msra.mxu1 %v3371_v44  ;;  %v3463_v43 = vld [vmem:[#allocation2 + $0x508] ss:$16 sps:$4 sm:$0xff]   ;;  %v3468_v44 = vld [vmem:[#allocation2 + $0x524] ss:$16 sps:$4 sm:$0xff]  }
  0x7b   :  { %1719 = vmatprep.subr.bf16.mxu0 %v3376_v45  ;;  %1883 = vmatprep.subr.bf16.mxu1 %v3379_v46  ;;  %v3471_v45 = vld [vmem:[#allocation2 + $0x52c] ss:$16 sps:$4 sm:$0xff]   ;;  %v3466_v46 = vld [vmem:[#allocation2 + $0x520] ss:$16 sps:$4 sm:$0xff]  }
  0x7e   :  { %1720 = vmatpush1.bf16.msra.mxu0 %v3374_v47  ;;  %1884 = vmatpush1.bf16.msra.mxu1 %v3377_v48  ;;  %v3469_v47 = vld [vmem:[#allocation2 + $0x528] ss:$16 sps:$4 sm:$0xff]   ;;  %v3474_v48 = vld [vmem:[#allocation2 + $0x544] ss:$16 sps:$4 sm:$0xff]  }
  0x7f   :  { %1721 = vmatprep.subr.bf16.mxu0 %v3382_v49  ;;  %1885 = vmatprep.subr.bf16.mxu1 %v3385_v50  ;;  %v3477_v49 = vld [vmem:[#allocation2 + $0x54c] ss:$16 sps:$4 sm:$0xff]   ;;  %v3472_v50 = vld [vmem:[#allocation2 + $0x540] ss:$16 sps:$4 sm:$0xff]  }
  0x82   :  { %1722 = vmatpush1.bf16.msra.mxu0 %v3380_v51  ;;  %1886 = vmatpush1.bf16.msra.mxu1 %v3383_v52  ;;  %v3475_v51 = vld [vmem:[#allocation2 + $0x548] ss:$16 sps:$4 sm:$0xff]   ;;  %v3480_v52 = vld [vmem:[#allocation2 + $0x564] ss:$16 sps:$4 sm:$0xff]  }
  0x83   :  { %1723 = vmatprep.subr.bf16.mxu0 %v3388_v53  ;;  %1887 = vmatprep.subr.bf16.mxu1 %v3391_v54  ;;  %v3483_v53 = vld [vmem:[#allocation2 + $0x56c] ss:$16 sps:$4 sm:$0xff]   ;;  %v3478_v54 = vld [vmem:[#allocation2 + $0x560] ss:$16 sps:$4 sm:$0xff]  }
  0x86   :  { %1724 = vmatpush1.bf16.msra.mxu0 %v3386_v55  ;;  %1888 = vmatpush1.bf16.msra.mxu1 %v3389_v56  ;;  %v3481_v55 = vld [vmem:[#allocation2 + $0x568] ss:$16 sps:$4 sm:$0xff]   ;;  %v3486_v56 = vld [vmem:[#allocation2 + $0x584] ss:$16 sps:$4 sm:$0xff]  }
  0x87   :  { %1725 = vmatprep.subr.bf16.mxu0 %v3394_v57  ;;  %1889 = vmatprep.subr.bf16.mxu1 %v3397_v58  ;;  %v3489_v57 = vld [vmem:[#allocation2 + $0x58c] ss:$16 sps:$4 sm:$0xff]   ;;  %v3484_v58 = vld [vmem:[#allocation2 + $0x580] ss:$16 sps:$4 sm:$0xff]  }
  0x8a   :  { %1726 = vmatpush1.bf16.msra.mxu0 %v3392_v59  ;;  %1890 = vmatpush1.bf16.msra.mxu1 %v3395_v60  ;;  %v3487_v59 = vld [vmem:[#allocation2 + $0x588] ss:$16 sps:$4 sm:$0xff]   ;;  %v3492_v60 = vld [vmem:[#allocation2 + $0x5a4] ss:$16 sps:$4 sm:$0xff]  }
  0x8b   :  { %1727 = vmatprep.subr.bf16.mxu0 %v3400_v61  ;;  %1891 = vmatprep.subr.bf16.mxu1 %v3403_v62  ;;  %v3495_v61 = vld [vmem:[#allocation2 + $0x5ac] ss:$16 sps:$4 sm:$0xff]   ;;  %v3490_v62 = vld [vmem:[#allocation2 + $0x5a0] ss:$16 sps:$4 sm:$0xff]  }
  0x8e   :  { %1728 = vmatpush1.bf16.msra.mxu0 %v3398_v63  ;;  %1892 = vmatpush1.bf16.msra.mxu1 %v3401_v0  ;;  %v3493_v63 = vld [vmem:[#allocation2 + $0x5a8] ss:$16 sps:$4 sm:$0xff]   ;;  %v3498_v0 = vld [vmem:[#allocation2 + $0x5c4] ss:$16 sps:$4 sm:$0xff]  }
  0x8f   :  { %1729 = vmatprep.subr.bf16.mxu0 %v3406_v1  ;;  %1893 = vmatprep.subr.bf16.mxu1 %v3409_v2  ;;  %v3501_v1 = vld [vmem:[#allocation2 + $0x5cc] ss:$16 sps:$4 sm:$0xff]   ;;  %v3496_v2 = vld [vmem:[#allocation2 + $0x5c0] ss:$16 sps:$4 sm:$0xff]  }
  0x92   :  { %1730 = vmatpush1.bf16.msra.mxu0 %v3404_v3  ;;  %1894 = vmatpush1.bf16.msra.mxu1 %v3407_v4  ;;  %v3499_v3 = vld [vmem:[#allocation2 + $0x5c8] ss:$16 sps:$4 sm:$0xff]   ;;  %v3504_v4 = vld [vmem:[#allocation2 + $0x5e4] ss:$16 sps:$4 sm:$0xff]  }
  0x93   :  { %1740 = vmatprep.subr.bf16.mxu0 %v3414_v5  ;;  %1904 = vmatprep.subr.bf16.mxu1 %v3417_v6  ;;  %v3507_v5 = vld [vmem:[#allocation2 + $0x5ec] ss:$16 sps:$4 sm:$0xff]   ;;  %v3502_v6 = vld [vmem:[#allocation2 + $0x5e0] ss:$16 sps:$4 sm:$0xff]  }
  0x95   :  { %1732 = vmatmul.mubr.bf16.vlgmr.msra.gmra.mrb[0].mxu0 %v2738_v7  ;;  %1896 = vmatmul.mubr.bf16.vlgmr.msra.gmra.mrb[0].mxu1 %v2738_v7  ;;  %v3505_v7 = vld [vmem:[#allocation2 + $0x5e8] ss:$16 sps:$4 sm:$0xff]  }
  0x96   :  { %1741 = vmatpush1.bf16.msra.mxu0 %v3412_v8  ;;  %1905 = vmatpush1.bf16.msra.mxu1 %v3415_v9  ;;  %v3512_v8 = vld [vmem:[#allocation2 + $0x604] ss:$16 sps:$4 sm:$0xff]   ;;  %v3515_v9 = vld [vmem:[#allocation2 + $0x60c] ss:$16 sps:$4 sm:$0xff]  }
  0x97   :  { %1742 = vmatprep.subr.bf16.mxu0 %v3420_v10  ;;  %1906 = vmatprep.subr.bf16.mxu1 %v3423_v12  ;;  %v3510_v10 = vld [vmem:[#allocation2 + $0x600] ss:$16 sps:$4 sm:$0xff]   ;;  %v3513_v12 = vld [vmem:[#allocation2 + $0x608] ss:$16 sps:$4 sm:$0xff]  }
  0x98   :  { %1772 = vmatprep.mubr.bf16.mxu0 %v2741_v13  ;;  %1936 = vmatprep.mubr.bf16.mxu1 %v2741_v13  ;;  %v2740_v13 = vcombine.low %v3802_v11, %v3802_v11  ;;  %v3527_v11 = vld [vmem:[#allocation2 + $0x64c] ss:$16 sps:$4 sm:$0xff]  }
  0x9a   :  { %1743 = vmatpush1.bf16.msra.mxu0 %v3418_v14  ;;  %1907 = vmatpush1.bf16.msra.mxu1 %v3421_v15  ;;  %v3811_v14 = vld [vmem:[%s4049_s21 + $0x18] sm:$0xff]  ;;  %v3518_v15 = vld [vmem:[#allocation2 + $0x624] ss:$16 sps:$4 sm:$0xff]  }
  0x9b   :  { %1744 = vmatprep.subr.bf16.mxu0 %v3426_v16  ;;  %1908 = vmatprep.subr.bf16.mxu1 %v3429_v17  ;;  %v3521_v16 = vld [vmem:[#allocation2 + $0x62c] ss:$16 sps:$4 sm:$0xff]   ;;  %v3516_v17 = vld [vmem:[#allocation2 + $0x620] ss:$16 sps:$4 sm:$0xff]  }
  0x9e   :  { %1745 = vmatpush1.bf16.msra.mxu0 %v3424_v18  ;;  %1909 = vmatpush1.bf16.msra.mxu1 %v3427_v19  ;;  %v3519_v18 = vld [vmem:[#allocation2 + $0x628] ss:$16 sps:$4 sm:$0xff]   ;;  %v2743_v19 = vcombine.high %v3811_v14, %v3811_v14 }
  0x9f   :  { %1746 = vmatprep.subr.bf16.mxu0 %v3432_v20  ;;  %1910 = vmatprep.subr.bf16.mxu1 %v3435_v21  ;;  %v3524_v20 = vld [vmem:[#allocation2 + $0x644] ss:$16 sps:$4 sm:$0xff]   ;;  %v3522_v21 = vld [vmem:[#allocation2 + $0x640] ss:$16 sps:$4 sm:$0xff]  }
  0xa2   :  { %1747 = vmatpush1.bf16.msra.mxu0 %v3430_v22  ;;  %1911 = vmatpush1.bf16.msra.mxu1 %v3433_v23  ;;  %v3525_v22 = vld [vmem:[#allocation2 + $0x648] ss:$16 sps:$4 sm:$0xff]   ;;  %v3530_v23 = vld [vmem:[#allocation2 + $0x664] ss:$16 sps:$4 sm:$0xff]  }
  0xa3   :  { %1748 = vmatprep.subr.bf16.mxu0 %v3438_v24  ;;  %1912 = vmatprep.subr.bf16.mxu1 %v3441_v25  ;;  %v3533_v24 = vld [vmem:[#allocation2 + $0x66c] ss:$16 sps:$4 sm:$0xff]   ;;  %v3528_v25 = vld [vmem:[#allocation2 + $0x660] ss:$16 sps:$4 sm:$0xff]  }
  0xa6   :  { %1749 = vmatpush1.bf16.msra.mxu0 %v3436_v26  ;;  %1913 = vmatpush1.bf16.msra.mxu1 %v3439_v27  ;;  %v3531_v26 = vld [vmem:[#allocation2 + $0x668] ss:$16 sps:$4 sm:$0xff]   ;;  %v3536_v27 = vld [vmem:[#allocation2 + $0x684] ss:$16 sps:$4 sm:$0xff]  }
  0xa7   :  { %1750 = vmatprep.subr.bf16.mxu0 %v3444_v28  ;;  %1914 = vmatprep.subr.bf16.mxu1 %v3447_v29  ;;  %v3539_v28 = vld [vmem:[#allocation2 + $0x68c] ss:$16 sps:$4 sm:$0xff]   ;;  %v3534_v29 = vld [vmem:[#allocation2 + $0x680] ss:$16 sps:$4 sm:$0xff]  }
  0xaa   :  { %1751 = vmatpush1.bf16.msra.mxu0 %v3442_v30  ;;  %1915 = vmatpush1.bf16.msra.mxu1 %v3445_v31  ;;  %v3537_v30 = vld [vmem:[#allocation2 + $0x688] ss:$16 sps:$4 sm:$0xff]   ;;  %v3542_v31 = vld [vmem:[#allocation2 + $0x6a4] ss:$16 sps:$4 sm:$0xff]  }
  0xab   :  { %1752 = vmatprep.subr.bf16.mxu0 %v3450_v32  ;;  %1916 = vmatprep.subr.bf16.mxu1 %v3453_v33  ;;  %v3545_v32 = vld [vmem:[#allocation2 + $0x6ac] ss:$16 sps:$4 sm:$0xff]   ;;  %v3540_v33 = vld [vmem:[#allocation2 + $0x6a0] ss:$16 sps:$4 sm:$0xff]  }
  0xae   :  { %1753 = vmatpush1.bf16.msra.mxu0 %v3448_v34  ;;  %1917 = vmatpush1.bf16.msra.mxu1 %v3451_v35  ;;  %v3543_v34 = vld [vmem:[#allocation2 + $0x6a8] ss:$16 sps:$4 sm:$0xff]   ;;  %v3548_v35 = vld [vmem:[#allocation2 + $0x6c4] ss:$16 sps:$4 sm:$0xff]  }
  0xaf   :  { %1754 = vmatprep.subr.bf16.mxu0 %v3456_v36  ;;  %1918 = vmatprep.subr.bf16.mxu1 %v3459_v37  ;;  %v3551_v36 = vld [vmem:[#allocation2 + $0x6cc] ss:$16 sps:$4 sm:$0xff]   ;;  %v3546_v37 = vld [vmem:[#allocation2 + $0x6c0] ss:$16 sps:$4 sm:$0xff]  }
  0xb2   :  { %1755 = vmatpush1.bf16.msra.mxu0 %v3454_v38  ;;  %1919 = vmatpush1.bf16.msra.mxu1 %v3457_v39  ;;  %v3549_v38 = vld [vmem:[#allocation2 + $0x6c8] ss:$16 sps:$4 sm:$0xff]   ;;  %v3554_v39 = vld [vmem:[#allocation2 + $0x6e4] ss:$16 sps:$4 sm:$0xff]  }
  0xb3   :  { %1756 = vmatprep.subr.bf16.mxu0 %v3462_v40  ;;  %1920 = vmatprep.subr.bf16.mxu1 %v3465_v41  ;;  %v3557_v40 = vld [vmem:[#allocation2 + $0x6ec] ss:$16 sps:$4 sm:$0xff]   ;;  %v3552_v41 = vld [vmem:[#allocation2 + $0x6e0] ss:$16 sps:$4 sm:$0xff]  }
  0xb6   :  { %1757 = vmatpush1.bf16.msra.mxu0 %v3460_v42  ;;  %1921 = vmatpush1.bf16.msra.mxu1 %v3463_v43  ;;  %v3555_v42 = vld [vmem:[#allocation2 + $0x6e8] ss:$16 sps:$4 sm:$0xff]   ;;  %v3560_v43 = vld [vmem:[#allocation2 + $0x704] ss:$16 sps:$4 sm:$0xff]  }
  0xb7   :  { %1758 = vmatprep.subr.bf16.mxu0 %v3468_v44  ;;  %1922 = vmatprep.subr.bf16.mxu1 %v3471_v45  ;;  %v3563_v44 = vld [vmem:[#allocation2 + $0x70c] ss:$16 sps:$4 sm:$0xff]   ;;  %v3558_v45 = vld [vmem:[#allocation2 + $0x700] ss:$16 sps:$4 sm:$0xff]  }
  0xba   :  { %1759 = vmatpush1.bf16.msra.mxu0 %v3466_v46  ;;  %1923 = vmatpush1.bf16.msra.mxu1 %v3469_v47  ;;  %v3561_v46 = vld [vmem:[#allocation2 + $0x708] ss:$16 sps:$4 sm:$0xff]   ;;  %v3566_v47 = vld [vmem:[#allocation2 + $0x724] ss:$16 sps:$4 sm:$0xff]  }
  0xbb   :  { %1760 = vmatprep.subr.bf16.mxu0 %v3474_v48  ;;  %1924 = vmatprep.subr.bf16.mxu1 %v3477_v49  ;;  %v3569_v48 = vld [vmem:[#allocation2 + $0x72c] ss:$16 sps:$4 sm:$0xff]   ;;  %v3564_v49 = vld [vmem:[#allocation2 + $0x720] ss:$16 sps:$4 sm:$0xff]  }
  0xbe   :  { %1761 = vmatpush1.bf16.msra.mxu0 %v3472_v50  ;;  %1925 = vmatpush1.bf16.msra.mxu1 %v3475_v51  ;;  %v3567_v50 = vld [vmem:[#allocation2 + $0x728] ss:$16 sps:$4 sm:$0xff]   ;;  %v3572_v51 = vld [vmem:[#allocation2 + $0x744] ss:$16 sps:$4 sm:$0xff]  }
  0xbf   :  { %1762 = vmatprep.subr.bf16.mxu0 %v3480_v52  ;;  %1926 = vmatprep.subr.bf16.mxu1 %v3483_v53  ;;  %v3575_v52 = vld [vmem:[#allocation2 + $0x74c] ss:$16 sps:$4 sm:$0xff]   ;;  %v3570_v53 = vld [vmem:[#allocation2 + $0x740] ss:$16 sps:$4 sm:$0xff]  }
  0xc2   :  { %1763 = vmatpush1.bf16.msra.mxu0 %v3478_v54  ;;  %1927 = vmatpush1.bf16.msra.mxu1 %v3481_v55  ;;  %v3573_v54 = vld [vmem:[#allocation2 + $0x748] ss:$16 sps:$4 sm:$0xff]   ;;  %v3578_v55 = vld [vmem:[#allocation2 + $0x764] ss:$16 sps:$4 sm:$0xff]  }
  0xc3   :  { %1764 = vmatprep.subr.bf16.mxu0 %v3486_v56  ;;  %1928 = vmatprep.subr.bf16.mxu1 %v3489_v57  ;;  %v3581_v56 = vld [vmem:[#allocation2 + $0x76c] ss:$16 sps:$4 sm:$0xff]   ;;  %v3576_v57 = vld [vmem:[#allocation2 + $0x760] ss:$16 sps:$4 sm:$0xff]  }
  0xc6   :  { %1765 = vmatpush1.bf16.msra.mxu0 %v3484_v58  ;;  %1929 = vmatpush1.bf16.msra.mxu1 %v3487_v59  ;;  %v3579_v58 = vld [vmem:[#allocation2 + $0x768] ss:$16 sps:$4 sm:$0xff]   ;;  %v3584_v59 = vld [vmem:[#allocation2 + $0x784] ss:$16 sps:$4 sm:$0xff]  }
  0xc7   :  { %1766 = vmatprep.subr.bf16.mxu0 %v3492_v60  ;;  %1930 = vmatprep.subr.bf16.mxu1 %v3495_v61  ;;  %v3587_v60 = vld [vmem:[#allocation2 + $0x78c] ss:$16 sps:$4 sm:$0xff]   ;;  %v3582_v61 = vld [vmem:[#allocation2 + $0x780] ss:$16 sps:$4 sm:$0xff]  }
  0xca   :  { %1767 = vmatpush1.bf16.msra.mxu0 %v3490_v62  ;;  %1931 = vmatpush1.bf16.msra.mxu1 %v3493_v63  ;;  %v3585_v62 = vld [vmem:[#allocation2 + $0x788] ss:$16 sps:$4 sm:$0xff]   ;;  %v3590_v63 = vld [vmem:[#allocation2 + $0x7a4] ss:$16 sps:$4 sm:$0xff]  }
  0xcb   :  { %1768 = vmatprep.subr.bf16.mxu0 %v3498_v0  ;;  %1932 = vmatprep.subr.bf16.mxu1 %v3501_v1  ;;  %v3593_v0 = vld [vmem:[#allocation2 + $0x7ac] ss:$16 sps:$4 sm:$0xff]   ;;  %v3588_v1 = vld [vmem:[#allocation2 + $0x7a0] ss:$16 sps:$4 sm:$0xff]  }
  0xce   :  { %1769 = vmatpush1.bf16.msra.mxu0 %v3496_v2  ;;  %1933 = vmatpush1.bf16.msra.mxu1 %v3499_v3  ;;  %v3591_v2 = vld [vmem:[#allocation2 + $0x7a8] ss:$16 sps:$4 sm:$0xff]   ;;  %v3596_v3 = vld [vmem:[#allocation2 + $0x7c4] ss:$16 sps:$4 sm:$0xff]  }
  0xcf   :  { %1770 = vmatprep.subr.bf16.mxu0 %v3504_v4  ;;  %1934 = vmatprep.subr.bf16.mxu1 %v3507_v5  ;;  %v3599_v4 = vld [vmem:[#allocation2 + $0x7cc] ss:$16 sps:$4 sm:$0xff]   ;;  %v3594_v5 = vld [vmem:[#allocation2 + $0x7c0] ss:$16 sps:$4 sm:$0xff]  }
  0xd2   :  { %1771 = vmatpush1.bf16.msra.mxu0 %v3502_v6  ;;  %1935 = vmatpush1.bf16.msra.mxu1 %v3505_v7  ;;  %v3597_v6 = vld [vmem:[#allocation2 + $0x7c8] ss:$16 sps:$4 sm:$0xff]   ;;  %v3602_v7 = vld [vmem:[#allocation2 + $0x7e4] ss:$16 sps:$4 sm:$0xff]  }
  0xd3   :  { %1781 = vmatprep.subr.bf16.mxu0 %v3512_v8  ;;  %1945 = vmatprep.subr.bf16.mxu1 %v3515_v9  ;;  %v3605_v8 = vld [vmem:[#allocation2 + $0x7ec] ss:$16 sps:$4 sm:$0xff]   ;;  %v3600_v9 = vld [vmem:[#allocation2 + $0x7e0] ss:$16 sps:$4 sm:$0xff]  }
  0xd5   :  { %1773 = vmatmul.mubr.bf16.vlgmr.msra.gmra.mrb[0].mxu0 %v2740_v13  ;;  %1937 = vmatmul.mubr.bf16.vlgmr.msra.gmra.mrb[0].mxu1 %v2740_v13  ;;  %v3609_v13 = vld [vmem:[%s4034_s4 + $0xc0] sm:$0xff]  }
  0xd6   :  { %1782 = vmatpush1.bf16.msra.mxu0 %v3510_v10  ;;  %1946 = vmatpush1.bf16.msra.mxu1 %v3513_v12  ;;  %v3603_v10 = vld [vmem:[#allocation2 + $0x7e8] ss:$16 sps:$4 sm:$0xff]   ;;  %v3608_v12 = vld [vmem:[%s4034_s4 + $0x40] sm:$0xff]  }
  0xd7   :  { %1783 = vmatprep.subr.bf16.mxu0 %v3518_v15  ;;  %1947 = vmatprep.subr.bf16.mxu1 %v3521_v16  ;;  %v2742_v15 = vcombine.low %v3811_v14, %v3811_v14  ;;  %v3610_v16 = vld [vmem:[%s4034_s4] sm:$0xff]   ;;  %v3613_v14 = vld [vmem:[%s4034_s4 + $0xc8] sm:$0xff]  }
  0xd8   :  { %1813 = vmatprep.mubr.bf16.mxu0 %v2743_v19  ;;  %1977 = vmatprep.mubr.bf16.mxu1 %v2743_v19  ;;  %v3614_v19 = vld [vmem:[%s4034_s4 + $0x8] sm:$0xff]  }
  0xda   :  { %1784 = vmatpush1.bf16.msra.mxu0 %v3516_v17  ;;  %1948 = vmatpush1.bf16.msra.mxu1 %v3519_v18  ;;  %v3611_v17 = vld [vmem:[%s4034_s4 + $0x80] sm:$0xff]   ;;  %v3612_v18 = vld [vmem:[%s4034_s4 + $0x48] sm:$0xff]  }
  0xdb   :  { %1785 = vmatprep.subr.bf16.mxu0 %v3524_v20  ;;  %1949 = vmatprep.subr.bf16.mxu1 %v3527_v11  ;;  %v3615_v20 = vld [vmem:[%s4034_s4 + $0x88] sm:$0xff]   ;;  %v3616_v11 = vld [vmem:[%s4034_s4 + $0x50] sm:$0xff]  }
  0xde   :  { %1786 = vmatpush1.bf16.msra.mxu0 %v3522_v21  ;;  %1950 = vmatpush1.bf16.msra.mxu1 %v3525_v22  ;;  %v3617_v21 = vld [vmem:[%s4034_s4 + $0xd0] sm:$0xff]  }
  0xdf   :  { %1787 = vmatprep.subr.bf16.mxu0 %v3530_v23  ;;  %1951 = vmatprep.subr.bf16.mxu1 %v3533_v24  ;;  %v3618_v22 = vld [vmem:[%s4034_s4 + $0x10] sm:$0xff]   ;;  %v3620_v24 = vld [vmem:[%s4034_s4 + $0x58] sm:$0xff]  }
  0xe0   :  { %v3619_v23 = vld [vmem:[%s4034_s4 + $0x90] sm:$0xff]  }
  0xe2   :  { %1788 = vmatpush1.bf16.msra.mxu0 %v3528_v25  ;;  %1952 = vmatpush1.bf16.msra.mxu1 %v3531_v26  ;;  %v3621_v25 = vld [vmem:[%s4034_s4 + $0xd8] sm:$0xff]  }
  0xe3   :  { %1789 = vmatprep.subr.bf16.mxu0 %v3536_v27  ;;  %1953 = vmatprep.subr.bf16.mxu1 %v3539_v28  ;;  %v3622_v26 = vld [vmem:[%s4034_s4 + $0x18] sm:$0xff]   ;;  %v3624_v28 = vld [vmem:[%s4034_s4 + $0x60] sm:$0xff]  }
  0xe4   :  { %v3623_v27 = vld [vmem:[%s4034_s4 + $0x98] sm:$0xff]  }
  0xe6   :  { %1790 = vmatpush1.bf16.msra.mxu0 %v3534_v29  ;;  %1954 = vmatpush1.bf16.msra.mxu1 %v3537_v30  ;;  %v3625_v29 = vld [vmem:[%s4034_s4 + $0xe0] sm:$0xff]  }
  0xe7   :  { %1791 = vmatprep.subr.bf16.mxu0 %v3542_v31  ;;  %1955 = vmatprep.subr.bf16.mxu1 %v3545_v32  ;;  %v3626_v30 = vld [vmem:[%s4034_s4 + $0x20] sm:$0xff]   ;;  %v3628_v32 = vld [vmem:[%s4034_s4 + $0x68] sm:$0xff]  }
  0xe8   :  { %v3627_v31 = vld [vmem:[%s4034_s4 + $0xa0] sm:$0xff]  }
  0xea   :  { %1792 = vmatpush1.bf16.msra.mxu0 %v3540_v33  ;;  %1956 = vmatpush1.bf16.msra.mxu1 %v3543_v34  ;;  %v3629_v33 = vld [vmem:[%s4034_s4 + $0xe8] sm:$0xff]  }
  0xeb   :  { %1793 = vmatprep.subr.bf16.mxu0 %v3548_v35  ;;  %1957 = vmatprep.subr.bf16.mxu1 %v3551_v36  ;;  %v3630_v34 = vld [vmem:[%s4034_s4 + $0x28] sm:$0xff]   ;;  %v3632_v36 = vld [vmem:[%s4034_s4 + $0x70] sm:$0xff]  }
  0xec   :  { %v3631_v35 = vld [vmem:[%s4034_s4 + $0xa8] sm:$0xff]  }
  0xee   :  { %1794 = vmatpush1.bf16.msra.mxu0 %v3546_v37  ;;  %1958 = vmatpush1.bf16.msra.mxu1 %v3549_v38  ;;  %v3633_v37 = vld [vmem:[%s4034_s4 + $0xf0] sm:$0xff]  }
  0xef   :  { %1795 = vmatprep.subr.bf16.mxu0 %v3554_v39  ;;  %1959 = vmatprep.subr.bf16.mxu1 %v3557_v40  ;;  %v3634_v38 = vld [vmem:[%s4034_s4 + $0x30] sm:$0xff]   ;;  %v3636_v40 = vld [vmem:[%s4034_s4 + $0x78] sm:$0xff]  }
  0xf0   :  { %v3635_v39 = vld [vmem:[%s4034_s4 + $0xb0] sm:$0xff]  }
  0xf2   :  { %1796 = vmatpush1.bf16.msra.mxu0 %v3552_v41  ;;  %1960 = vmatpush1.bf16.msra.mxu1 %v3555_v42  ;;  %v3637_v41 = vld [vmem:[%s4034_s4 + $0xf8] sm:$0xff]  }
  0xf3   :  { %1797 = vmatprep.subr.bf16.mxu0 %v3560_v43  ;;  %1961 = vmatprep.subr.bf16.mxu1 %v3563_v44  ;;  %v3638_v42 = vld [vmem:[%s4034_s4 + $0x38] sm:$0xff]   ;;  %v3686_v44 = vmov 0.0  }
  0xf4   :  { %v3639_v43 = vld [vmem:[%s4034_s4 + $0xb8] sm:$0xff]  }
  0xf6   :  { %1798 = vmatpush1.bf16.msra.mxu0 %v3558_v45  ;;  %1962 = vmatpush1.bf16.msra.mxu1 %v3561_v46  ;;  %v330_v45 = vlaneseq }
  0xf7   :  { %1799 = vmatprep.subr.bf16.mxu0 %v3566_v47  ;;  %1963 = vmatprep.subr.bf16.mxu1 %v3569_v48 }
  0xf8   :  { %v331_v46 = vshrl.u32 %v330_v45, 7 }
  0xfa   :  { %1800 = vmatpush1.bf16.msra.mxu0 %v3564_v49  ;;  %1964 = vmatpush1.bf16.msra.mxu1 %v3567_v50  ;;  %v332_v47 = vsub.s32 0, %v331_v46  ;;  %v340_v48 = vsub.s32 2, %v331_v46  ;;  %v328_v49 = vld [vmem:[%s4033_s3] sm:$0xf]  ;;  %v336_v50 = vsub.s32 1, %v331_v46 }
  0xfb   :  { %1801 = vmatprep.subr.bf16.mxu0 %v3572_v51  ;;  %1965 = vmatprep.subr.bf16.mxu1 %v3575_v52  ;;  %v344_v51 = vsub.s32 3, %v331_v46 }
  0xfc   :  { %v333_v52 = vrot.slane %v328_v49, %v332_v47  ;;  %v3650_v47 = vld [vmem:[%s4040_s10] sm:$0xff]  }
  0xfe   :  { %1802 = vmatpush1.bf16.msra.mxu0 %v3570_v53  ;;  %1966 = vmatpush1.bf16.msra.mxu1 %v3573_v54  ;;  %v341_v53 = vrot.slane %v328_v49, %v340_v48  ;;  %v337_v54 = vrot.slane %v328_v49, %v336_v50  ;;  %v3042_v48 = vld [vmem:[%s4039_s9] ss:$0 sm:$0xff] }
  0xff   :  { %1803 = vmatprep.subr.bf16.mxu0 %v3578_v55  ;;  %1967 = vmatprep.subr.bf16.mxu1 %v3581_v56  ;;  %v345_v55 = vrot.slane %v328_v49, %v344_v51 }
 0x102   :  { %1804 = vmatpush1.bf16.msra.mxu0 %v3576_v57  ;;  %1968 = vmatpush1.bf16.msra.mxu1 %v3579_v58 }
 0x103   :  { %1805 = vmatprep.subr.bf16.mxu0 %v3584_v59  ;;  %1969 = vmatprep.subr.bf16.mxu1 %v3587_v60 }
 0x106   :  { %1806 = vmatpush1.bf16.msra.mxu0 %v3582_v61  ;;  %1970 = vmatpush1.bf16.msra.mxu1 %v3585_v62 }
 0x107   :  { %1807 = vmatprep.subr.bf16.mxu0 %v3590_v63  ;;  %1971 = vmatprep.subr.bf16.mxu1 %v3593_v0 }
 0x10a   :  { %1808 = vmatpush1.bf16.msra.mxu0 %v3588_v1  ;;  %1972 = vmatpush1.bf16.msra.mxu1 %v3591_v2 }
 0x10b   :  { %1809 = vmatprep.subr.bf16.mxu0 %v3596_v3  ;;  %1973 = vmatprep.subr.bf16.mxu1 %v3599_v4 }
 0x10e   :  { %1810 = vmatpush1.bf16.msra.mxu0 %v3594_v5  ;;  %1974 = vmatpush1.bf16.msra.mxu1 %v3597_v6 }
 0x10f   :  { %1811 = vmatprep.subr.bf16.mxu0 %v3602_v7  ;;  %1975 = vmatprep.subr.bf16.mxu1 %v3605_v8 }
 0x112   :  { %1812 = vmatpush1.bf16.msra.mxu0 %v3600_v9  ;;  %1976 = vmatpush1.bf16.msra.mxu1 %v3603_v10  ;;  %v3640_v10 = vld [vmem:[%s4036_s6] sm:$0xff]  }
 0x113   :  { %3060 = vmatprep.subr.bf16.mxu0 %v3608_v12  ;;  %3082 = vmatprep.subr.bf16.mxu1 %v3609_v13 }
 0x115   :  { %1814 = vmatmul.mubr.bf16.vlgmr.msra.gmra.mrb[0].mxu0 %v2742_v15  ;;  %1978 = vmatmul.mubr.bf16.vlgmr.msra.gmra.mrb[0].mxu1 %v2742_v15  ;;  %v3641_v15 = vld [vmem:[%s4036_s6 + $0x8] sm:$0xff]  }
 0x116   :  { %3061 = vmatpush3.bf16.msra.mxu0 %v3610_v16  ;;  %3083 = vmatpush3.bf16.msra.mxu1 %v3611_v17  ;;  %v3642_v16 = vld [vmem:[%s4036_s6 + $0x10] sm:$0xff]   ;;  %v3643_v17 = vld [vmem:[%s4036_s6 + $0x18] sm:$0xff]  }
 0x117   :  { %3062 = vmatprep.subr.bf16.mxu0 %v3612_v18  ;;  %3084 = vmatprep.subr.bf16.mxu1 %v3613_v14  ;;  %v3644_v18 = vld [vmem:[%s4036_s6 + $0x20] sm:$0xff]   ;;  %v3645_v14 = vld [vmem:[%s4036_s6 + $0x28] sm:$0xff]  }
 0x11a   :  { %3063 = vmatpush3.bf16.msra.mxu0 %v3614_v19  ;;  %3085 = vmatpush3.bf16.msra.mxu1 %v3615_v20  ;;  %v3646_v19 = vld [vmem:[%s4036_s6 + $0x30] sm:$0xff]   ;;  %v3647_v20 = vld [vmem:[%s4036_s6 + $0x38] sm:$0xff]  }
 0x11b   :  { %3064 = vmatprep.subr.bf16.mxu0 %v3616_v11  ;;  %3086 = vmatprep.subr.bf16.mxu1 %v3617_v21 }
 0x11e   :  { %3065 = vmatpush3.bf16.msra.mxu0 %v3618_v22  ;;  %3087 = vmatpush3.bf16.msra.mxu1 %v3619_v23  ;;  %v3000_v22 = vld [vmem:[%s4035_s5] ss:$0 sm:$0xff] }
 0x11f   :  { %3066 = vmatprep.subr.bf16.mxu0 %v3620_v24  ;;  %3088 = vmatprep.subr.bf16.mxu1 %v3621_v25 }
 0x122   :  { %3067 = vmatpush3.bf16.msra.mxu0 %v3622_v26  ;;  %3089 = vmatpush3.bf16.msra.mxu1 %v3623_v27 }
 0x123   :  { %3068 = vmatprep.subr.bf16.mxu0 %v3624_v28  ;;  %3090 = vmatprep.subr.bf16.mxu1 %v3625_v29 }
 0x126   :  { %3069 = vmatpush3.bf16.msra.mxu0 %v3626_v30  ;;  %3091 = vmatpush3.bf16.msra.mxu1 %v3627_v31 }
 0x127   :  { %3070 = vmatprep.subr.bf16.mxu0 %v3628_v32  ;;  %3092 = vmatprep.subr.bf16.mxu1 %v3629_v33 }
 0x12a   :  { %3071 = vmatpush3.bf16.msra.mxu0 %v3630_v34  ;;  %3093 = vmatpush3.bf16.msra.mxu1 %v3631_v35  ;;  %v3648_v34 = vld [vmem:[%s4038_s8] sm:$0xff]  }
 0x12b   :  { %3072 = vmatprep.subr.bf16.mxu0 %v3632_v36  ;;  %3094 = vmatprep.subr.bf16.mxu1 %v3633_v37  ;;  %v3649_v36 = vld [vmem:[%s4038_s8 + $0x8] sm:$0xff]   ;;  %v2520_v37 = vld [vmem:[%s4031_s1] sm:$0xff] }
 0x12c   :  { %2522 = vrot.lane.b32.xlu0 %v2520_v37, %s3688_s17 }
 0x12e   :  { %3073 = vmatpush3.bf16.msra.mxu0 %v3634_v38  ;;  %3095 = vmatpush3.bf16.msra.mxu1 %v3635_v39  ;;  %v3033_v38 = vld [vmem:[%s4037_s7] ss:$0 sm:$0xff] }
 0x12f   :  { %3074 = vmatprep.subr.bf16.mxu0 %v3636_v40  ;;  %3096 = vmatprep.subr.bf16.mxu1 %v3637_v41 }
 0x132   :  { %3075 = vmatpush3.bf16.msra.mxu0 %v3638_v42  ;;  %3097 = vmatpush3.bf16.msra.mxu1 %v3639_v43 }
 0x133   :  { %3127 = vmatprep.subr.bf16.mxu0 %v3686_v44  ;;  %3155 = vmatprep.subr.bf16.mxu1 %v3686_v44 }
 0x1e8   :  { %v1815_v56 = vpop.f32.mrb[0].mxu0  ;;  %v1979_v57 = vpop.f32.mrb[0].mxu1 }
 0x1e9   :  { %v3181_v58 = vadd.f32 %v1815_v56, %v333_v52  ;;  %v3183_v59 = vadd.f32 %v1979_v57, %v341_v53  ;;  %v1817_v60 = vpop.f32.mrb[1].mxu0  ;;  %v1981_v61 = vpop.f32.mrb[1].mxu1  ;;  %v3651_v57 = vld [vmem:[%s4042_s12] sm:$0xff]  }
 0x1ea   :  { %v3182_v62 = vadd.f32 %v1817_v60, %v337_v54  ;;  %v3184_v63 = vadd.f32 %v1981_v61, %v345_v55  ;;  %v1819_v0 = vpop.f32.mrb[2].mxu0  ;;  %v1983_v1 = vpop.f32.mrb[2].mxu1  ;;  %v3653_v60 = vld [vmem:[%s4042_s12 + $0x10] sm:$0xff]   ;;  %v3654_v61 = vld [vmem:[%s4042_s12 + $0x18] sm:$0xff]  }
 0x1eb   :  { %v1986_v2 = vmax.f32 %v3181_v58, 0.0  ;;  %v1988_v3 = vmax.f32 %v3183_v59, 0.0  ;;  %v1820_v4 = vpop.f32.mrb[3].mxu0  ;;  %v1984_v5 = vpop.f32.mrb[3].mxu1  ;;  %v3652_v59 = vld [vmem:[%s4042_s12 + $0x8] sm:$0xff]   ;;  %v3657_v0 = vld [vmem:[%s4042_s12 + $0x30] sm:$0xff]  }
 0x1ec   :  { %v1987_v6 = vmax.f32 %v3182_v62, 0.0  ;;  %v1989_v7 = vmax.f32 %v3184_v63, 0.0  ;;  %v2523_v53 = vpop.permute.xlu0 %2522  ;;  %v3655_v62 = vld [vmem:[%s4042_s12 + $0x20] sm:$0xff]   ;;  %v3656_v63 = vld [vmem:[%s4042_s12 + $0x28] sm:$0xff]   ;;  %v3658_v1 = vld [vmem:[%s4042_s12 + $0x38] sm:$0xff]  }
 0x1ed   :  { %v1990_v12 = vpack.c.bf16 %v1986_v2, %v1986_v2  ;;  %v1992_v13 = vpack.c.bf16 %v1988_v3, %v1988_v3  ;;  %v3046_v2 = vld [vmem:[%s4041_s11] ss:$0 sm:$0xff]  ;;  %s3689_s11 = smov 96  }
 0x1ee   :  { %v1991_v8 = vpack.c.bf16 %v1987_v6, %v1987_v6  ;;  %v1993_v9 = vpack.c.bf16 %v1989_v7, %v1989_v7 }
 0x1f0   :  { %2289 = vmatprep.mubr.bf16.mxu0 %v1991_v8  ;;  %2329 = vmatprep.mubr.bf16.mxu1 %v1993_v9 }
 0x1f1   :  { %2290 = vmatmul.mubr.bf16.vlgmr.msra.gmra.mrb[4].mxu0 %v1990_v12  ;;  %2330 = vmatmul.mubr.bf16.vlgmr.msra.gmra.mrb[4].mxu1 %v1992_v13 }
 0x1f2   :  { %3128 = vmatpush3.bf16.msra.mxu0 %v3640_v10  ;;  %3143 = vmatprep.mubr.msk.bf16.mxu0 %vm3687_vm0, %v3686_v44 }
 0x1f3   :  { %3129 = vmatprep.subr.bf16.mxu0 %v3686_v44  ;;  %3157 = vmatprep.mubr.msk.bf16.mxu1 %vm3687_vm0, %v3686_v44 }
 0x1f4   :  { %3156 = vmatpush3.bf16.msra.mxu1 %v3650_v47 }
 0x1f5   :  { %3161 = vmatprep.subr.bf16.mxu1 %v3686_v44 }
 0x1f6   :  { %3130 = vmatpush3.bf16.msra.mxu0 %v3641_v15  ;;  %v3058_v15 = vld [vmem:[%s4044_s14] ss:$0 sm:$0xff] }
 0x1f7   :  { %3131 = vmatprep.subr.bf16.mxu0 %v3686_v44 }
 0x1fa   :  { %3132 = vmatpush3.bf16.msra.mxu0 %v3642_v16 }
 0x1fb   :  { %3133 = vmatprep.subr.bf16.mxu0 %v3686_v44 }
 0x1fe   :  { %3134 = vmatpush3.bf16.msra.mxu0 %v3643_v17 }
 0x1ff   :  { %3135 = vmatprep.subr.bf16.mxu0 %v3686_v44 }
 0x202   :  { %3136 = vmatpush3.bf16.msra.mxu0 %v3644_v18 }
 0x203   :  { %3137 = vmatprep.subr.bf16.mxu0 %v3686_v44 }
 0x206   :  { %3138 = vmatpush3.bf16.msra.mxu0 %v3645_v14 }
 0x207   :  { %3139 = vmatprep.subr.bf16.mxu0 %v3686_v44 }
 0x20a   :  { %3140 = vmatpush3.bf16.msra.mxu0 %v3646_v19 }
 0x20b   :  { %3141 = vmatprep.subr.bf16.mxu0 %v3686_v44 }
 0x20e   :  { %3142 = vmatpush3.bf16.msra.mxu0 %v3647_v20 }
 0x20f   :  { %3147 = vmatprep.subr.bf16.mxu0 %v3686_v44 }
 0x2c4   :  { %v3076_v11 = vpop.f32.mrb[4].mxu0  ;;  %v3098_v21 = vpop.f32.mrb[4].mxu1 }
 0x2c5   :  { %v3077_v23 = vpop.f32.mrb[5].mxu0  ;;  %v3099_v24 = vpop.f32.mrb[5].mxu1 }
 0x2c6   :  { %v3078_v25 = vadd.f32 %v3077_v23, %v3076_v11  ;;  %v3100_v26 = vadd.f32 %v3099_v24, %v3098_v21  ;;  %v3079_v27 = vpop.f32.mrb[6].mxu0  ;;  %v3101_v28 = vpop.f32.mrb[6].mxu1 }
 0x2c7   :  { %v3080_v29 = vpop.f32.mrb[7].mxu0  ;;  %v3102_v30 = vpop.f32.mrb[7].mxu1 }
 0x2c8   :  { %v2292_v31 = vadd.f32 %v3078_v25, %v3000_v22  ;;  %v3059_v22 = vld [vmem:[%s4045_s15] ss:$0 sm:$0xff] }
 0x2ca   :  { %v2332_v32 = vadd.f32 %v3100_v26, %v2292_v31 }
 0x2cc   :  { %v2337_v33 = vmax.f32 %v2332_v32, 0.0 }
 0x2ce   :  { %v2338_v35 = vpack.c.bf16 %v2337_v33, %v2337_v33 }
 0x2d0   :  { %3144 = vmatmul.mubr.bf16.vlgmr.msra.gmra.mrb[8].mxu0 %v2338_v35 }
 0x2d1   :  { %3148 = vmatpush3.bf16.msra.mxu0 %v3648_v34  ;;  %3151 = vmatprep.mubr.msk.bf16.mxu0 %vm3687_vm0, %v3686_v44 }
 0x2d2   :  { %3149 = vmatprep.subr.bf16.mxu0 %v3686_v44 }
 0x2d5   :  { %3150 = vmatpush3.bf16.msra.mxu0 %v3649_v36 }
 0x3a3   :  { %v2444_v39 = vpop.f32.mrb[8].mxu0 }
 0x3a4   :  { %v2445_v40 = vadd.f32 %v3033_v38, %v2444_v39  ;;  %v3145_v41 = vpop.f32.mrb[9].mxu0 }
 0x3a5   :  { %v2447_v42 = vpop.f32.mrb[10].mxu0 }
 0x3a6   :  { %v2450_v43 = vmax.f32 %v2445_v40, 0.0  ;;  %v3146_v45 = vpop.f32.mrb[11].mxu0 }
 0x3a8   :  { %v2451_v46 = vpack.c.bf16 %v2450_v43, %v2450_v43 }
 0x3aa   :  { %3152 = vmatmul.mubr.msk.bf16.vlgmr.msra.gmra.mrb[12].mxu0 %vm2475_vm1, %v2451_v46 }
 0x47d   :  { %v2513_v49 = vpop.f32.mrb[12].mxu0 }
 0x47e   :  { %v2514_v50 = vadd.f32 %v3042_v48, %v2513_v49  ;;  %v3153_v51 = vpop.f32.mrb[13].mxu0 }
 0x47f   :  { %v2516_v52 = vpop.f32.mrb[14].mxu0 }
 0x480   :  { %v2519_v54 = vmax.f32 %v2514_v50, 0.0  ;;  %v3154_v55 = vpop.f32.mrb[15].mxu0 }
 0x482   :  { %v2526_v56 = vsel %vm2525_vm2, %v2519_v54, %v2523_v53 }
 0x483   :  { %v2527_v58 = vpack.c.bf16 %v2526_v56, %v2526_v56 }
 0x485   :  { %3158 = vmatmul.mubr.msk.bf16.vlgmr.msra.gmra.mrb[8].mxu1 %vm2543_vm3, %v2527_v58 }
 0x486   :  { %3162 = vmatpush3.bf16.msra.mxu1 %v3651_v57  ;;  %3177 = vmatprep.mubr.msk.bf16.mxu1 %vm3687_vm0, %v3686_v44 }
 0x487   :  { %3163 = vmatprep.subr.bf16.mxu1 %v3686_v44 }
 0x48a   :  { %3164 = vmatpush3.bf16.msra.mxu1 %v3652_v59 }
 0x48b   :  { %3165 = vmatprep.subr.bf16.mxu1 %v3686_v44 }
 0x48e   :  { %3166 = vmatpush3.bf16.msra.mxu1 %v3653_v60 }
 0x48f   :  { %3167 = vmatprep.subr.bf16.mxu1 %v3686_v44 }
 0x492   :  { %3168 = vmatpush3.bf16.msra.mxu1 %v3654_v61 }
 0x493   :  { %3169 = vmatprep.subr.bf16.mxu1 %v3686_v44 }
 0x496   :  { %3170 = vmatpush3.bf16.msra.mxu1 %v3655_v62 }
 0x497   :  { %3171 = vmatprep.subr.bf16.mxu1 %v3686_v44 }
 0x49a   :  { %3172 = vmatpush3.bf16.msra.mxu1 %v3656_v63 }
 0x49b   :  { %3173 = vmatprep.subr.bf16.mxu1 %v3686_v44 }
 0x49e   :  { %3174 = vmatpush3.bf16.msra.mxu1 %v3657_v0 }
 0x49f   :  { %3175 = vmatprep.subr.bf16.mxu1 %v3686_v44  ;;  %v3049_v44 = vld [vmem:[%s4043_s13] ss:$0 sm:$0xff] }
 0x4a2   :  { %3176 = vmatpush3.bf16.msra.mxu1 %v3658_v1 }
 0x558   :  { %v2581_v3 = vpop.f32.mrb[8].mxu1 }
 0x559   :  { %v2582_v4 = vadd.f32 %v3046_v2, %v2581_v3  ;;  %v3159_v5 = vpop.f32.mrb[9].mxu1 }
 0x55a   :  { %v2584_v6 = vpop.f32.mrb[10].mxu1 }
 0x55b   :  { %v2587_v7 = vmax.f32 %v2582_v4, 0.0  ;;  %v3160_v8 = vpop.f32.mrb[11].mxu1 }
 0x55d   :  { %v2588_v9 = vpack.c.bf16 %v2587_v7, %v2587_v7 }
 0x55f   :  { %3178 = vmatmul.mubr.bf16.vlgmr.msra.gmra.mrb[12].mxu1 %v2588_v9 }
 0x632   :  { %v2694_v10 = vpop.f32.mrb[12].mxu1 }
 0x633   :  { %v2695_v12 = vadd.f32 %v3049_v44, %v2694_v10  ;;  %v3179_v13 = vpop.f32.mrb[13].mxu1 }
 0x634   :  { %v2697_v16 = vpop.f32.mrb[14].mxu1 }
 0x635   :  { %v2700_v17 = vmax.f32 %v2695_v12, 0.0  ;;  %v3180_v18 = vpop.f32.mrb[15].mxu1 }
 0x637   :  { %v2708_v14 = vmul.f32 %v3058_v15, %v2700_v17 }
 0x639   :  { %2713 = vrot.lane.b32.xlu0 %v2708_v14, %s3689_s11  ;;  %v2709_v19 = vsel %vm2475_vm1, %v2708_v14, 0.0 }
 0x63a   :  { %2710 = vadd.xlane.f32.xlu1 %v2709_v19 }
 0x6ab   :  { %v2714_v20 = vpop.permute.xlu0 %2713 }
 0x6ac   :  { %v2716_v11 = vsel %vm2475_vm1, %v2714_v20, 0.0 }
 0x6ad   :  { %2717 = vadd.xlane.f32.xlu1 %v2716_v11 }
 0x6c7   :  { %v2711_v21 = vpop.xlane.xlu1 %2710 }
 0x73a   :  { %v2718_v23 = vpop.xlane.xlu1 %2717 }
 0x73b   :  { %v2720_v24 = vsel %vm2719_vm4, %v2711_v21, %v2718_v23 }
 0x73c   :  { %v2728_v25 = vadd.f32 %v3059_v22, %v2720_v24 }
 0x73e   :  { %2730 = vst.msk [vmem:[%s4046_s16] sm:$0xff] %vm2729_vm5, %v2728_v25 }
 0x73f   :  { %2735 = vsyncpa [#allocation3], 1 }

</bundles_post_ra>
